<compile_context>
chip_gen: v5e
topology: v5e:2x2
jax: 0.10.0
libtpu: 0.0.40
codegen_flags: <defaults>
</compile_context>

<pallas_src>
import jax
import jax.numpy as jnp
from jax.experimental import pallas as pl
from jax.experimental.pallas import tpu as pltpu


def convgru_kernel(h_ref, x_ref, wh_ref, wx_ref, b_ref, out_ref):
    # h_ref: (H, tl), x_ref: (D, tl), wh_ref: (3H, H) bf16, wx_ref: (3H, D) bf16,
    # b_ref: (3H, 1) f32, out_ref: (H, tl)
    H = out_ref.shape[0]

    h_f32 = h_ref[...].astype(jnp.float32)
    h_bf = h_ref[...].astype(jnp.bfloat16)
    x_bf = x_ref[...].astype(jnp.bfloat16)

    w_h = wh_ref[...]                      # (3H, H) bf16
    w_x = wx_ref[...]                      # (3H, D) bf16
    b = b_ref[...]                         # (3H, 1) f32

    # x-contribution of all three gates in one wide matmul; bias folded in so
    # there is a single broadcast for all gates.
    gx = jnp.dot(w_x, x_bf, preferred_element_type=jnp.float32) + b     # (3H, tl)

    # Fused z|r gates.
    zr = jnp.dot(w_h[:2 * H, :], h_bf,
                 preferred_element_type=jnp.float32) + gx[:2 * H, :]    # (2H, tl)
    z = jax.nn.sigmoid(zr[:H, :])
    r = jax.nn.sigmoid(zr[H:, :])

    # Candidate state.
    rh_bf = (r * h_f32).astype(jnp.bfloat16)
    q = jnp.tanh(jnp.dot(w_h[2 * H:, :], rh_bf,
                         preferred_element_type=jnp.float32) + gx[2 * H:, :])

    out_ref[...] = ((1.0 - z) * h_f32 + z * q).astype(out_ref.dtype)


def convgru_pallas(h_ncl, x_ncl, params, *, tl=512):
    """h_ncl: (N, H, L), x_ncl: (N, D, L) -> new hidden state (N, H, L)."""
    N, H, L = h_ncl.shape
    _, D, _ = x_ncl.shape
    wz, wr, wq, bz, br, bq = params        # PyTorch layout: w*: (H, H+D), b*: (H,)

    # One-time wrapper-side packing: fuse the three gates along the output-row
    # axis and split each into h-/x- parts; bf16 MXU operands.
    w_h = jnp.concatenate([wz[:, :H], wr[:, :H], wq[:, :H]], axis=0).astype(jnp.bfloat16)  # (3H, H)
    w_x = jnp.concatenate([wz[:, H:], wr[:, H:], wq[:, H:]], axis=0).astype(jnp.bfloat16)  # (3H, D)
    b_all = jnp.concatenate([bz, br, bq], axis=0).reshape(3 * H, 1).astype(jnp.float32)    # (3H, 1)

    # Lane tile along L: multiple of 128, no larger than padded L.
    tl = max(128, (min(tl, pl.cdiv(L, 128) * 128) // 128) * 128)
    L_pad = pl.cdiv(L, tl) * tl
    if L_pad != L:
        pad = [(0, 0), (0, 0), (0, L_pad - L)]
        h_in = jnp.pad(h_ncl, pad)
        x_in = jnp.pad(x_ncl, pad)
    else:
        h_in, x_in = h_ncl, x_ncl

    grid = (N, L_pad // tl)

    def act_spec(C):
        # Batch dim squeezed out; (C, tl) block with L on the lane axis.
        return pl.BlockSpec((None, C, tl), lambda n, l: (n, 0, l))

    # Whole-array VMEM residents for the invariant operands (no double-buffer).
    resident = pl.BlockSpec(memory_space=pltpu.MemorySpace.VMEM)

    out = pl.pallas_call(
        convgru_kernel,
        out_shape=jax.ShapeDtypeStruct((N, H, L_pad), h_ncl.dtype),
        grid=grid,
        in_specs=[act_spec(H), act_spec(D), resident, resident, resident],
        out_specs=act_spec(H),
        # Per-step VMEM footprint here is << default scoped limit; set
        # vmem_limit_bytes explicitly if H/D/tl are scaled up (v7x: 64 MiB phys).
        compiler_params=pltpu.CompilerParams(
            dimension_semantics=("parallel", "parallel")),
    )(h_in, x_in, w_h, w_x, b_all)

    return out[:, :, :L] if L_pad != L else out


def convgru_reference(h_ncl, x_ncl, params, matmul_dtype=jnp.float32):
    """Plain-JAX reference mirroring the PyTorch forward (NCL layout).

    matmul_dtype=bfloat16 mimics the kernel's bf16 MXU operands (f32 accum).
    """
    wz, wr, wq, bz, br, bq = params

    def conv1x1(inp, w, b):
        y = jnp.einsum('oc,ncl->nol', w.astype(matmul_dtype),
                       inp.astype(matmul_dtype),
                       preferred_element_type=jnp.float32)
        return y + b[None, :, None]

    hx = jnp.concatenate([h_ncl, x_ncl], axis=1)
    z = jax.nn.sigmoid(conv1x1(hx, wz, bz))
    r = jax.nn.sigmoid(conv1x1(hx, wr, br))
    rh_x = jnp.concatenate([r * h_ncl, x_ncl], axis=1)
    q = jnp.tanh(conv1x1(rh_x, wq, bq))
    return (1.0 - z) * h_ncl + z * q


def init_params(key, input_dim, hidden_dim):
    """PyTorch Conv1d-style init; weights stored as (out=H, in=H+D)."""
    C_in = input_dim + hidden_dim
    ks = jax.random.split(key, 6)
    scale = 1.0 / jnp.sqrt(C_in)
    wz = jax.random.uniform(ks[0], (hidden_dim, C_in), jnp.float32, -scale, scale)
    wr = jax.random.uniform(ks[1], (hidden_dim, C_in), jnp.float32, -scale, scale)
    wq = jax.random.uniform(ks[2], (hidden_dim, C_in), jnp.float32, -scale, scale)
    bz = jax.random.uniform(ks[3], (hidden_dim,), jnp.float32, -scale, scale)
    br = jax.random.uniform(ks[4], (hidden_dim,), jnp.float32, -scale, scale)
    bq = jax.random.uniform(ks[5], (hidden_dim,), jnp.float32, -scale, scale)
    return (wz, wr, wq, bz, br, bq)


if __name__ == "__main__":
    # Small shapes consistent with the module: ConvGRU(input_dim=16, hidden_dim=32),
    # batch=2, length=1000 (non-multiple of the tile, exercising tail handling).
    N, D, H, L = 2, 16, 32, 1000

    key = jax.random.PRNGKey(0)
    k_h, k_x, k_p = jax.random.split(key, 3)
    h = jax.random.normal(k_h, (N, H, L), jnp.float32)   # hidden state, NCL
    x = jax.random.normal(k_x, (N, D, L), jnp.float32)   # input, NCL
    params = init_params(k_p, D, H)

    out = convgru_pallas(h, x, params)
    out = jax.block_until_ready(out)
    assert out.shape == (N, H, L)

    # Tight check vs a reference using the same bf16 matmul quantization.
    ref_bf16 = convgru_reference(h, x, params, matmul_dtype=jnp.bfloat16)
    assert jnp.allclose(out, ref_bf16, atol=1e-3, rtol=1e-3), \
        "mismatch vs bf16-matmul reference"

    # Looser check vs the pure-f32 PyTorch-equivalent forward.
    ref_f32 = convgru_reference(h, x, params, matmul_dtype=jnp.float32)
    assert jnp.allclose(out, ref_f32, atol=5e-2, rtol=5e-2), \
        "mismatch vs f32 reference"

    print("KERNEL_OK")
</pallas_src>

<mosaic_0001>
module attributes {stable_mosaic.version = 11 : i64} {
  func.func @convgru_kernel(%arg0: i32, %arg1: i32, %arg2: memref<1x32x512xf32, #tpu.memory_space<vmem>>, %arg3: memref<1x16x512xf32, #tpu.memory_space<vmem>>, %arg4: memref<96x32xbf16, #tpu.memory_space<vmem>>, %arg5: memref<96x16xbf16, #tpu.memory_space<vmem>>, %arg6: memref<96x1xf32, #tpu.memory_space<vmem>>, %arg7: memref<1x32x512xf32, #tpu.memory_space<vmem>>) attributes {dimension_semantics = [#tpu.dimension_semantics<parallel>, #tpu.dimension_semantics<parallel>], iteration_bounds = array<i64: 2, 2>, scalar_prefetch = 0 : i64, scratch_operands = 0 : i64, tpu.core_type = #tpu.core_type<tc>, window_params = [{transform_indices = @transform_0, window_bounds = array<i64: 1, 32, 512>}, {transform_indices = @transform_1, window_bounds = array<i64: 1, 16, 512>}, {pipeline_mode = #tpu.pipeline_mode<synchronous>, transform_indices = @transform_2, window_bounds = array<i64: 96, 32>}, {pipeline_mode = #tpu.pipeline_mode<synchronous>, transform_indices = @transform_3, window_bounds = array<i64: 96, 16>}, {pipeline_mode = #tpu.pipeline_mode<synchronous>, transform_indices = @transform_4, window_bounds = array<i64: 96, 1>}, {transform_indices = @transform_5, window_bounds = array<i64: 1, 32, 512>}]} {
    %c0 = arith.constant 0 : index
    %c0_0 = arith.constant 0 : index
    %c0_1 = arith.constant 0 : index
    %0 = vector.load %arg2[%c0, %c0_0, %c0_1] : memref<1x32x512xf32, #tpu.memory_space<vmem>>, vector<1x32x512xf32>
    %1 = vector.shape_cast %0 : vector<1x32x512xf32> to vector<32x512xf32>
    %c0_2 = arith.constant 0 : index
    %c0_3 = arith.constant 0 : index
    %c0_4 = arith.constant 0 : index
    %2 = vector.load %arg2[%c0_2, %c0_3, %c0_4] : memref<1x32x512xf32, #tpu.memory_space<vmem>>, vector<1x32x512xf32>
    %3 = vector.shape_cast %2 : vector<1x32x512xf32> to vector<32x512xf32>
    %4 = arith.truncf %3 : vector<32x512xf32> to vector<32x512xbf16>
    %c0_5 = arith.constant 0 : index
    %c0_6 = arith.constant 0 : index
    %c0_7 = arith.constant 0 : index
    %5 = vector.load %arg3[%c0_5, %c0_6, %c0_7] : memref<1x16x512xf32, #tpu.memory_space<vmem>>, vector<1x16x512xf32>
    %6 = vector.shape_cast %5 : vector<1x16x512xf32> to vector<16x512xf32>
    %7 = arith.truncf %6 : vector<16x512xf32> to vector<16x512xbf16>
    %c0_8 = arith.constant 0 : index
    %c0_9 = arith.constant 0 : index
    %8 = vector.load %arg4[%c0_8, %c0_9] : memref<96x32xbf16, #tpu.memory_space<vmem>>, vector<96x32xbf16>
    %c0_10 = arith.constant 0 : index
    %c0_11 = arith.constant 0 : index
    %9 = vector.load %arg5[%c0_10, %c0_11] : memref<96x16xbf16, #tpu.memory_space<vmem>>, vector<96x16xbf16>
    %c0_12 = arith.constant 0 : index
    %c0_13 = arith.constant 0 : index
    %10 = vector.load %arg6[%c0_12, %c0_13] : memref<96x1xf32, #tpu.memory_space<vmem>>, vector<96x1xf32>
    %cst = arith.constant dense<0.000000e+00> : vector<96x512xf32>
    %11 = tpu.matmul %9, %7, %cst {dimension_numbers = #tpu.dot_dimension_numbers<[1], [0], [0], [1], [0, 0, 1, 1], [], []>} : vector<96x16xbf16>, vector<16x512xbf16>, vector<96x512xf32> -> vector<96x512xf32>
    %12 = vector.broadcast %10 : vector<96x1xf32> to vector<96x512xf32>
    %13 = arith.addf %11, %12 : vector<96x512xf32>
    %14 = vector.extract_strided_slice %8 {offsets = [0, 0], sizes = [64, 32], strides = [1, 1]} : vector<96x32xbf16> to vector<64x32xbf16>
    %cst_14 = arith.constant dense<0.000000e+00> : vector<64x512xf32>
    %15 = tpu.matmul %14, %4, %cst_14 {dimension_numbers = #tpu.dot_dimension_numbers<[1], [0], [0], [1], [0, 0, 1, 1], [], []>} : vector<64x32xbf16>, vector<32x512xbf16>, vector<64x512xf32> -> vector<64x512xf32>
    %16 = vector.extract_strided_slice %13 {offsets = [0, 0], sizes = [64, 512], strides = [1, 1]} : vector<96x512xf32> to vector<64x512xf32>
    %17 = arith.addf %15, %16 : vector<64x512xf32>
    %18 = vector.extract_strided_slice %17 {offsets = [0, 0], sizes = [32, 512], strides = [1, 1]} : vector<64x512xf32> to vector<32x512xf32>
    %19 = arith.negf %18 : vector<32x512xf32>
    %20 = math.exp %19 : vector<32x512xf32>
    %cst_15 = arith.constant 1.000000e+00 : f32
    %21 = vector.broadcast %cst_15 : f32 to vector<32x512xf32>
    %22 = arith.addf %21, %20 : vector<32x512xf32>
    %23 = arith.divf %21, %22 : vector<32x512xf32>
    %24 = vector.extract_strided_slice %17 {offsets = [32, 0], sizes = [32, 512], strides = [1, 1]} : vector<64x512xf32> to vector<32x512xf32>
    %25 = arith.negf %24 : vector<32x512xf32>
    %26 = math.exp %25 : vector<32x512xf32>
    %cst_16 = arith.constant 1.000000e+00 : f32
    %27 = vector.broadcast %cst_16 : f32 to vector<32x512xf32>
    %28 = arith.addf %27, %26 : vector<32x512xf32>
    %29 = arith.divf %27, %28 : vector<32x512xf32>
    %30 = arith.mulf %29, %1 : vector<32x512xf32>
    %31 = arith.truncf %30 : vector<32x512xf32> to vector<32x512xbf16>
    %32 = vector.extract_strided_slice %8 {offsets = [64, 0], sizes = [32, 32], strides = [1, 1]} : vector<96x32xbf16> to vector<32x32xbf16>
    %cst_17 = arith.constant dense<0.000000e+00> : vector<32x512xf32>
    %33 = tpu.matmul %32, %31, %cst_17 {dimension_numbers = #tpu.dot_dimension_numbers<[1], [0], [0], [1], [0, 0, 1, 1], [], []>} : vector<32x32xbf16>, vector<32x512xbf16>, vector<32x512xf32> -> vector<32x512xf32>
    %34 = vector.extract_strided_slice %13 {offsets = [64, 0], sizes = [32, 512], strides = [1, 1]} : vector<96x512xf32> to vector<32x512xf32>
    %35 = arith.addf %33, %34 : vector<32x512xf32>
    %36 = math.tanh %35 : vector<32x512xf32>
    %cst_18 = arith.constant 1.000000e+00 : f32
    %37 = vector.broadcast %cst_18 : f32 to vector<32x512xf32>
    %38 = arith.subf %37, %23 : vector<32x512xf32>
    %39 = arith.mulf %38, %1 : vector<32x512xf32>
    %40 = arith.mulf %23, %36 : vector<32x512xf32>
    %41 = arith.addf %39, %40 : vector<32x512xf32>
    %c0_19 = arith.constant 0 : index
    %c0_20 = arith.constant 0 : index
    %c0_21 = arith.constant 0 : index
    %42 = vector.load %arg7[%c0_19, %c0_20, %c0_21] : memref<1x32x512xf32, #tpu.memory_space<vmem>>, vector<1x32x512xf32>
    %43 = vector.shape_cast %42 : vector<1x32x512xf32> to vector<32x512xf32>
    %44 = vector.shape_cast %41 : vector<32x512xf32> to vector<1x32x512xf32>
    tpu.vector_store %arg7[%c0_19, %c0_20, %c0_21], %44 {strides = array<i32>} : memref<1x32x512xf32, #tpu.memory_space<vmem>>, vector<1x32x512xf32>,
    return
  }
  func.func @transform_0(%arg0: i32, %arg1: i32) -> (i32, i32, i32) {
    %c0_i32 = arith.constant 0 : i32
    %c0_i32_0 = arith.constant 0 : i32
    return %arg0, %c0_i32, %arg1 : i32, i32, i32
  }
  func.func @transform_1(%arg0: i32, %arg1: i32) -> (i32, i32, i32) {
    %c0_i32 = arith.constant 0 : i32
    %c0_i32_0 = arith.constant 0 : i32
    return %arg0, %c0_i32, %arg1 : i32, i32, i32
  }
  func.func @transform_2(%arg0: i32, %arg1: i32) -> (i32, i32) {
    %c0_i32 = arith.constant 0 : i32
    %c0_i32_0 = arith.constant 0 : i32
    %c0_i32_1 = arith.constant 0 : i32
    return %c0_i32, %c0_i32_0 : i32, i32
  }
  func.func @transform_3(%arg0: i32, %arg1: i32) -> (i32, i32) {
    %c0_i32 = arith.constant 0 : i32
    %c0_i32_0 = arith.constant 0 : i32
    %c0_i32_1 = arith.constant 0 : i32
    return %c0_i32, %c0_i32_0 : i32, i32
  }
  func.func @transform_4(%arg0: i32, %arg1: i32) -> (i32, i32) {
    %c0_i32 = arith.constant 0 : i32
    %c0_i32_0 = arith.constant 0 : i32
    %c0_i32_1 = arith.constant 0 : i32
    return %c0_i32, %c0_i32_0 : i32, i32
  }
  func.func @transform_5(%arg0: i32, %arg1: i32) -> (i32, i32, i32) {
    %c0_i32 = arith.constant 0 : i32
    %c0_i32_0 = arith.constant 0 : i32
    return %arg0, %c0_i32, %arg1 : i32, i32, i32
  }
}

</mosaic_0001>

<bundles_post_ra>
// kernel: tpu_custom_call.1
= control target key start
LH: loop header
LB: loop body
LE: loop exit
PB: predicated region body
PF: predicated region fallthrough
CT: control target
= control target key end

     0   :  { %s3872_s0 = inlined_call_operand.hbm [shape: f32[2,32,1024], index: 0, kind: input, shape index: {}]   ;;  %s3873_s1 = inlined_call_operand.hbm [shape: f32[2,16,1024], index: 1, kind: input, shape index: {}]   ;;  %s3874_s2 = inlined_call_operand.vmem [shape: bf16[96,32], index: 2, kind: input, shape index: {}]   ;;  %s3875_s3 = inlined_call_operand.vmem [shape: bf16[96,16], index: 3, kind: input, shape index: {}]   ;;  %s3876_s4 = inlined_call_operand.vmem [shape: f32[96,1], index: 4, kind: input, shape index: {}]   ;;  %s3877_s5 = inlined_call_operand.hbm [shape: f32[2,32,1024], index: 5, kind: output, shape index: {}]  }
   0x1   :  { %3925 = sst [smem:[#allocation59_spill]] %s3872_s0 }
   0x2   :  { %10 = vsyncpa [#allocation3], 0 }
   0x3   :  { %12 = vsyncpa [#allocation3 + $0x1], 0 }
   0x4   :  { %13 = vsyncpa [#allocation6], 0 }
   0x5   :  { %15 = vsyncpa [#allocation6 + $0x1], 0 }
   0x6   :  { %16 = vsyncpa [#allocation4], 0 }
   0x7   :  { %18 = vsyncpa [#allocation4 + $0x1], 0  ;;  %s2386_s18 = smov 0   ;;  %s2388_s19 = smov 0  }
   0x8   :  { %s2390_s20 = smov 0   ;;  %s2392_s21 = smov 0  }
   0x9   :  { %s2394_s22 = smov 0   ;;  %s2396_s23 = smov 0  }
   0xa   :  { %s2398_s24 = smov 0   ;;  %s2400_s25 = smov 0  }
   0xb LB: > { %3926 = sst [smem:[#allocation11_spill]] %s2319_s18  ;;  %s1753_s26 = sadd.s32 4294967295, %s2347_s25   ;;  %s2347_s25 = sphi %s2400_s25, %s24_s25   ;;  %s2343_s24 = sphi %s2398_s24, %s4158_s24   ;;  %s2339_s23 = sphi %s2396_s23, %s4152_s23   ;;  %s2335_s22 = sphi %s2394_s22, %s4157_s22   ;;  %s2331_s21 = sphi %s2392_s21, %s4156_s21   ;;  %s2327_s20 = sphi %s2390_s20, %s4150_s20   ;;  %s2323_s19 = sphi %s2388_s19, %s4155_s19   ;;  %s2319_s18 = sphi %s2386_s18, %s4154_s18  }
   0xc   : > { %3927 = sst [smem:[#allocation12_spill]] %s2327_s20  ;;  %s1754_s27 = sadd.s32 4294967294, %s2347_s25  }
   0xd   : > { %3928 = sst [smem:[#allocation13_spill]] %s2339_s23  ;;  %s33_s28 = sadd.s32 1, %s2339_s23 }
   0xe   : > { %s36_s29 = sadd.s32 1, %s2343_s24  ;;  %p34_p0 = scmp.ge.s32.totalorder %s33_s28, 2 }
   0xf   : > { %s45_s30 = sadd.s32 1, %s2327_s20  ;;  %p52_p1 = scmp.ne.s32.totalorder %s2327_s20, %s2323_s19 }
  0x10   : > { %p53_p2 = scmp.eq.s32.totalorder %s2347_s25, 0  ;;  %s4160_s28 = smov (%p34_p0, %s33_s28), 0 }
  0x11   : > { %3929 = sst [smem:[#allocation14_spill]] %s4160_s28  ;;  %s4162_s29 = smov (!%p34_p0, %s36_s29), %s2343_s24 }
  0x12   : > { %s41_s6 = ssub.s32 %s2339_s23, %s4160_s28  ;;  %p2439_p3 = por %p53_p2, %p52_p1 }
  0x13   : > { %p38_p4 = scmp.ge.s32.totalorder %s4162_s29, 2  ;;  %p58_p5 = scmp.ne.s32.totalorder %s2323_s19, %s2319_s18 }
  0x14   : > { %p59_p6 = scmp.eq.s32.totalorder %s1753_s26, 0  ;;  %p175_p7 = scmp.eq.s32.totalorder %s1753_s26, 3 }
  0x15   : > { %s4164_s29 = smov (%p38_p4, %s4162_s29), 0  ;;  %p181_p10 = scmp.eq.s32.totalorder %s1754_s27, 3 }
  0x16   : > { %3931 = sst [smem:[#allocation15_spill]] %s4164_s29  ;;  %p2447_p8 = por %p59_p6, %p58_p5 }
  0x17   : > { %p2451_p9 = por %p175_p7, %p52_p1  ;;  %s40_s10 = ssub.s32 %s2343_s24, %s4164_s29 }
  0x18   : > { %s42_s11 = sor.u32 %s41_s6, %s40_s10  ;;  %p2457_p12 = por %p181_p10, %p58_p5 }
  0x19   : > { %s3933_s9 = scalar_select %p2451_p9, 1, 0 }
  0x1a   : > { %p43_p11 = scmp.eq.s32.totalorder %s42_s11, 0  ;;  %p1932_p13 = scmp.lt.s32.totalorder %s2347_s25, 4 }
  0x1b   : > { %3934 = sst [smem:[#allocation16_spill]] %s3933_s9  ;;  %s2463_s13 = sand.u32 1, %s2327_s20  }
  0x1c   : > { %s3935_s12 = scalar_select %p2457_p12, 1, 0 }
  0x1d   : > { %s2466_s14 = scalar_select %p43_p11, %s2327_s20, %s45_s30  }
  0x1e   : > { %3936 = sst [smem:[#allocation17_spill]] %s3935_s12  ;;  %s1757_s15 = sshll.u32 %s2463_s13, 7 }
  0x1f   : > { %3937 = sst [smem:[#allocation18_spill]] %s2466_s14  ;;  %s1758_s16 = sshll.u32 %s2339_s23, 2 }
  0x20   : > { %s1759_s17 = sshll.u32 %s2343_s24, 5  ;;  %s214_s26 = scalar_lea.vmem [#allocation2], %s1757_s15 }
  0x21   : > { %s224_s27 = sshll.u32 %s214_s26, 4  ;;  %s219_s6 = sadd.s32 %s1759_s17, %s1758_s16  ;;  %s225_s27 = int_to_ptr.vmem [resolvable:$true] %s224_s27 }
  0x22   : > { %s1760_s10 = sshll.u32 %s219_s6, 3  ;;  %p2473_p0 = pnand %p1932_p13, %p2439_p3 }
  0x23   : > { %s3939_s0 = sld [smem:[#allocation59_spill]]  ;;  %p1765_p1 = scmp.ge.s32.totalorder %s2347_s25, 1 }
  0x24   : > { %s211_s15 = scalar_lea.sflag [#allocation3], %s2463_s13  ;;  %s2349_s14 = smov 1024  }
  0x25   : > { %s2350_s26 = smov 512   ;;  %s2351_s17 = smov 32  }
  0x26   : > { %p256_p2 = scmp.lt.s32.totalorder %s2347_s25, 5  ;;  %s1761_s7 = sshll.u32 %s2463_s13, 6 }
  0x27   : > { %s1763_s6 = sshll.u32 %s2343_s24, 4  ;;  %s238_s12 = scalar_lea.vmem [#allocation5], %s1761_s7 }
  0x28   : > { %p257_p3 = pnand %p1765_p1, %p256_p2  ;;  %s243_s20 = sadd.s32 %s1763_s6, %s1758_s16 }
  0x29   : > { %s221_s30 = scalar_lea.hbm %s3939_s0, %s1760_s10  ;;  %s248_s28 = sshll.u32 %s238_s12, 4  ;;  %s249_s28 = int_to_ptr.vmem [resolvable:$true] %s248_s28 }
  0x2a   : > { %s222_s23 = sshll.u32 %s221_s30, 4  ;;  %s1764_s29 = sshll.u32 %s243_s20, 3  ;;  %s223_s23 = int_to_ptr.hbm [resolvable:$true] %s222_s23 }
  0x2b   : > { %1924 = dma.hbm_to_vmem [thread:$0]  (!%p2473_p0), %s223_s23, 2048, %s225_s27, %s211_s15, %s2349_s14, %s2350_s26, %s2351_s17  }
  0x2c   : > { %s245_s0 = scalar_lea.hbm %s3873_s1, %s1764_s29  ;;  %s235_s9 = scalar_lea.sflag [#allocation6], %s2463_s13 }
  0x2d   : > { %s246_s18 = sshll.u32 %s245_s0, 4  ;;  %260 = sbr.rel (%p257_p3) target bundleno = 591 (0x24f), region = 40  ;;  %s247_s18 = int_to_ptr.hbm [resolvable:$true] %s246_s18 }
  0x2e   : > { %1927 = dma.hbm_to_vmem [thread:$0]  (!%p2473_p0), %s247_s18, 1024, %s249_s28, %s235_s9, %s2349_s14, %s2350_s26, %s2351_s17  }
  0x32   : > { %s2494_s23 = sand.u32 1, %s2323_s19  }
  0x33   : > { %s1766_s12 = sshll.u32 %s2494_s23, 7  ;;  %s263_s20 = scalar_lea.sflag [#allocation3], %s2494_s23 }
  0x34   : > { %s2500_s16 = scalar_lea.vmem [#allocation2], %s1766_s12 }
  0x35   : > { %2306 = dma.done.wait (%p2447_p8), %s263_s20, 2048  }
  0x36   : > { %2308 = vsyncadd (%p2447_p8), %s263_s20, 4294965248  ;;  %s1767_s0 = sshll.u32 %s2494_s23, 6  ;;  %s273_s18 = scalar_lea.sflag [#allocation6], %s2494_s23 }
  0x37   : > { %s276_s9 = scalar_lea.vmem [#allocation5], %s1767_s0 }
  0x38   : > { %2310 = dma.done.wait (%p2447_p8), %s273_s18, 1024  }
  0x39   : > { %2312 = vsyncadd (%p2447_p8), %s273_s18, 4294966272  ;;  %v2352_v0 = vmov 0   ;;  %v337_v1 = vld [vmem:[%s276_s9] sm:$0xff]  ;;  %v338_v3 = vld [vmem:[%s276_s9 + $0x8] sm:$0xff]  ;;  %vm475_vm0 = vcmask 130048   ;;  %vm670_vm1 = vcmask 261120  }
  0x3a   : > { %2005 = vset.pattern.permute.xlu0 %v2352_v0  ;;  %2006 = vset.pattern.permute.xlu1 %v2352_v0  ;;  %v341_v2 = vld [vmem:[%s276_s9 + $0x20] sm:$0xff]  ;;  %v342_v5 = vld [vmem:[%s276_s9 + $0x28] sm:$0xff]  ;;  %v339_v6 = vld [vmem:[%s276_s9 + $0x10] sm:$0xff]  ;;  %s3547_s10 = scalar_lea.vmem [#allocation7], %s1766_s12  ;;  %s1898_s12 = sshll.u32 %s2331_s21, 2 }
  0x3b   : > { %2007 = vset.pattern.permute.xlu2 %v2352_v0  ;;  %v345_v4 = vpack.c.bf16 %v341_v2, %v337_v1  ;;  %v343_v7 = vld [vmem:[%s276_s9 + $0x30] sm:$0xff]  ;;  %v346_v8 = vpack.c.bf16 %v342_v5, %v338_v3  ;;  %v340_v10 = vld [vmem:[%s276_s9 + $0x18] sm:$0xff]  ;;  %v1909_v12 = vld [vmem:[%s3875_s3] sm:$0xff]  ;;  %s1899_s30 = sshll.u32 %s2335_s22, 5  ;;  %s1620_s8 = scalar_lea.sflag [#allocation4], %s2494_s23 }
  0x3c   : > { %v347_v9 = vpack.c.bf16 %v343_v7, %v339_v6  ;;  %v344_v11 = vld [vmem:[%s276_s9 + $0x38] sm:$0xff]  ;;  %v379_v14 = vld [vmem:[%s3876_s4 + $0x30] sm:$0xff]  ;;  %v377_v15 = vld [vmem:[%s3876_s4 + $0x20] sm:$0xff]  ;;  %s1631_s21 = sadd.s32 %s1899_s30, %s1898_s12  ;;  %s1634_s9 = sshll.u32 %s3547_s10, 4  ;;  %s1635_s9 = int_to_ptr.vmem [resolvable:$true] %s1634_s9 }
  0x3d   : > { %501 = vmatpush.bf16.msra.mxu0 %v345_v4  ;;  %v348_v13 = vpack.c.bf16 %v344_v11, %v340_v10  ;;  %540 = vmatpush.bf16.msra.mxu1 %v346_v8  ;;  %v373_v16 = vld [vmem:[%s3876_s4] sm:$0xff]  ;;  %v380_v17 = vld [vmem:[%s3876_s4 + $0x38] sm:$0xff]  ;;  %v378_v18 = vld [vmem:[%s3876_s4 + $0x28] sm:$0xff]  ;;  %s1900_s22 = sshll.u32 %s1631_s21, 3  ;;  %s2265_s17 = scalar_lea.hbm %s3877_s5, 512 }
  0x3e   : > { %579 = vmatpush.bf16.msra.mxu2 %v347_v9  ;;  %417 = vperm.xlu0 %2005, %v379_v14   ;;  %v374_v19 = vld [vmem:[%s3876_s4 + $0x8] sm:$0xff]  ;;  %v375_v21 = vld [vmem:[%s3876_s4 + $0x10] sm:$0xff]  ;;  %v376_v22 = vld [vmem:[%s3876_s4 + $0x18] sm:$0xff]  ;;  %s1633_s18 = scalar_lea.hbm %s3877_s5, %s1900_s22 }
  0x3f   : > { %618 = vmatpush.bf16.msra.mxu3 %v348_v13  ;;  %407 = vperm.xlu1 %2006, %v377_v15   ;;  %v1910_v20 = vld [vmem:[%s3875_s3 + $0x8] sm:$0xff]  ;;  %v2551_v23 = vld [vmem:[%s2500_s16 + $0x50] sm:$0xff]  ;;  %v324_v25 = vld [vmem:[%s2500_s16 + $0x58] sm:$0xff]  ;;  %s1636_s14 = sshll.u32 %s1633_s18, 4  ;;  %s1637_s14 = int_to_ptr.hbm [resolvable:$true] %s1636_s14 }
  0x40   : > { %1793 = vmatmul.msk.bf16.vlgmr.msra.gmra.mxu0 %vm475_vm0, %v1909_v12  ;;  %1799 = vmatmul.msk.bf16.vlgmr.msra.gmra.mxu1 %vm475_vm0, %v1909_v12  ;;  %v2554_v24 = vld [vmem:[%s2500_s16 + $0x70] sm:$0xff]  ;;  %v328_v27 = vld [vmem:[%s2500_s16 + $0x78] sm:$0xff]  ;;  %v2568_v30 = vld [vmem:[%s2500_s16 + $0x40] sm:$0xff]  ;;  %s2259_s27 = sshra.s32 %s1637_s14, 4  ;;  %s2260_s27 = int_to_ptr.hbm [resolvable:$true] %s2259_s27 }
  0x41   : > { %1805 = vmatmul.msk.bf16.vlgmr.msra.gmra.mxu2 %vm475_vm0, %v1909_v12  ;;  %387 = vperm.xlu2 %2007, %v373_v16   ;;  %v335_v26 = vpack.c.bf16 %v2554_v24, %v2551_v23  ;;  %v336_v28 = vpack.c.bf16 %v328_v27, %v324_v25  ;;  %v1911_v29 = vld [vmem:[%s3875_s3 + $0x10] sm:$0xff]  ;;  %v2571_v31 = vld [vmem:[%s2500_s16 + $0x60] sm:$0xff]  ;;  %v2574_v32 = vld [vmem:[%s2500_s16 + $0x48] sm:$0xff]  ;;  %s2261_s11 = scalar_lea.hbm %s2260_s27, 128  ;;  %p2266_p7 = scmp.lt.s32.totalorder %s2260_s27, %s3877_s5 }
  0x42   : > { %1811 = vmatmul.msk.bf16.vlgmr.msra.gmra.mxu3 %vm475_vm0, %v1909_v12  ;;  %v333_v33 = vpack.c.bf16 %v2571_v31, %v2568_v30  ;;  %v2579_v34 = vld [vmem:[%s2500_s16 + $0x68] sm:$0xff]  ;;  %v1912_v36 = vld [vmem:[%s3875_s3 + $0x18] sm:$0xff]  ;;  %v2594_v38 = vld [vmem:[%s2500_s16] sm:$0xff]  ;;  %p2262_p4 = scmp.ne.s32.totalorder %s2260_s27, %s2261_s11  ;;  %p2267_p8 = scmp.lt.s32.totalorder %s2265_s17, %s2261_s11 }
  0x43   : > { %747 = vmatpush.bf16.msrb.mxu2 %v335_v26  ;;  %776 = vmatpush.bf16.msrb.mxu3 %v336_v28  ;;  %v334_v35 = vpack.c.bf16 %v2579_v34, %v2574_v32  ;;  %v382_v37 = vld [vmem:[%s3876_s4 + $0x48] sm:$0xff]  ;;  %v2597_v39 = vld [vmem:[%s2500_s16 + $0x20] sm:$0xff]  ;;  %v315_v43 = vld [vmem:[%s2500_s16 + $0x10] sm:$0xff] }
  0x44   : > { %689 = vmatpush.bf16.msrb.mxu0 %v333_v33  ;;  %v329_v40 = vpack.c.bf16 %v2597_v39, %v2594_v38  ;;  %v2602_v41 = vld [vmem:[%s2500_s16 + $0x8] sm:$0xff]  ;;  %v319_v45 = vld [vmem:[%s2500_s16 + $0x30] sm:$0xff]  ;;  %v316_v46 = vld [vmem:[%s2500_s16 + $0x18] sm:$0xff]  ;;  %p2263_p5 = pnand %p2262_p4, %p2451_p9  ;;  %p2268_p10 = por %p2267_p8, %p2266_p7 }
  0x45   : > { %718 = vmatpush.bf16.msrb.mxu1 %v334_v35  ;;  %v2605_v42 = vld [vmem:[%s2500_s16 + $0x28] sm:$0xff]  ;;  %v320_v47 = vld [vmem:[%s2500_s16 + $0x38] sm:$0xff]  ;;  %v331_v48 = vpack.c.bf16 %v319_v45, %v315_v43  ;;  %v1913_v50 = vld [vmem:[%s3875_s3 + $0x20] sm:$0xff] }
  0x46   : > { %422 = vperm.xlu0 %2005, %v380_v17   ;;  %v330_v44 = vpack.c.bf16 %v2605_v42, %v2602_v41  ;;  %v332_v49 = vpack.c.bf16 %v320_v47, %v316_v46  ;;  %v383_v51 = vld [vmem:[%s3876_s4 + $0x50] sm:$0xff]  ;;  %v381_v52 = vld [vmem:[%s3876_s4 + $0x40] sm:$0xff]  ;;  %v1914_v53 = vld [vmem:[%s3875_s3 + $0x28] sm:$0xff]  ;;  %p2264_p6 = pneg %p2263_p5 }
  0x47   : > { %412 = vperm.xlu1 %2006, %v378_v18   ;;  %748 = vmatpush.bf16.msrb.mxu2 %v331_v48  ;;  %v1903_v54 = vld [vmem:[%s3874_s2] sm:$0xff]  ;;  %v384_v55 = vld [vmem:[%s3876_s4 + $0x58] sm:$0xff]  ;;  %v1904_v56 = vld [vmem:[%s3874_s2 + $0x8] sm:$0xff] }
  0x48   : > { %690 = vmatpush.bf16.msrb.mxu0 %v329_v40  ;;  %777 = vmatpush.bf16.msrb.mxu3 %v332_v49  ;;  %v1905_v57 = vld [vmem:[%s3874_s2 + $0x10] sm:$0xff]  ;;  %v1906_v1 = vld [vmem:[%s3874_s2 + $0x18] sm:$0xff]  ;;  %p2269_p11 = pnand %p2268_p10, %p2264_p6 }
  0x49   : > { %392 = vperm.xlu2 %2007, %v374_v19   ;;  %719 = vmatpush.bf16.msrb.mxu1 %v330_v44 }
  0x4e   : > { %397 = vperm.xlu0 %2005, %v375_v21  }
  0x4f   : > { %402 = vperm.xlu1 %2006, %v376_v22  }
  0x50   : > { %1794 = vmatmul.msk.bf16.gmra.mxu0 %vm475_vm0, %v1910_v20  ;;  %1800 = vmatmul.msk.bf16.gmra.mxu1 %vm475_vm0, %v1910_v20 }
  0x51   : > { %1806 = vmatmul.msk.bf16.gmra.mxu2 %vm475_vm0, %v1910_v20  ;;  %427 = vperm.xlu2 %2007, %v381_v52  }
  0x52   : > { %1812 = vmatmul.msk.bf16.gmra.mxu3 %vm475_vm0, %v1910_v20 }
  0x56   : > { %432 = vperm.xlu0 %2005, %v382_v37  }
  0x57   : > { %437 = vperm.xlu1 %2006, %v383_v51  }
  0x59   : > { %442 = vperm.xlu2 %2007, %v384_v55  }
  0x60   : > { %1795 = vmatmul.msk.bf16.gmra.mxu0 %vm475_vm0, %v1911_v29  ;;  %1801 = vmatmul.msk.bf16.gmra.mxu1 %vm475_vm0, %v1911_v29 }
  0x61   : > { %1807 = vmatmul.msk.bf16.gmra.mxu2 %vm475_vm0, %v1911_v29 }
  0x62   : > { %1813 = vmatmul.msk.bf16.gmra.mxu3 %vm475_vm0, %v1911_v29 }
  0x70   : > { %1796 = vmatmul.msk.bf16.gmra.mxu0 %vm475_vm0, %v1912_v36  ;;  %1802 = vmatmul.msk.bf16.gmra.mxu1 %vm475_vm0, %v1912_v36 }
  0x71   : > { %1808 = vmatmul.msk.bf16.gmra.mxu2 %vm475_vm0, %v1912_v36 }
  0x72   : > { %1814 = vmatmul.msk.bf16.gmra.mxu3 %vm475_vm0, %v1912_v36 }
  0x80   : > { %1797 = vmatmul.msk.bf16.gmra.mxu0 %vm475_vm0, %v1913_v50  ;;  %1803 = vmatmul.msk.bf16.gmra.mxu1 %vm475_vm0, %v1913_v50 }
  0x81   : > { %1809 = vmatmul.msk.bf16.gmra.mxu2 %vm475_vm0, %v1913_v50 }
  0x82   : > { %1815 = vmatmul.msk.bf16.gmra.mxu3 %vm475_vm0, %v1913_v50 }
  0x90   : > { %1798 = vmatmul.msk.bf16.gmra.mxu0 %vm475_vm0, %v1914_v53  ;;  %1804 = vmatmul.msk.bf16.gmra.mxu1 %vm475_vm0, %v1914_v53 }
  0x91   : > { %1810 = vmatmul.msk.bf16.gmra.mxu2 %vm475_vm0, %v1914_v53 }
  0x92   : > { %1816 = vmatmul.msk.bf16.gmra.mxu3 %vm475_vm0, %v1914_v53 }
  0x9b   : > { %v388_v51 = vpop.permute.xlu2 %387 }
  0xa0   : > { %1833 = vmatmul.msk.bf16.vlgmr.msrb.gmra.mxu0 %vm670_vm1, %v1903_v54  ;;  %1837 = vmatmul.msk.bf16.vlgmr.msrb.gmra.mxu1 %vm670_vm1, %v1903_v54 }
  0xa1   : > { %1841 = vmatmul.msk.bf16.vlgmr.msrb.gmra.mxu2 %vm670_vm1, %v1903_v54 }
  0xa2   : > { %1845 = vmatmul.msk.bf16.vlgmr.msrb.gmra.mxu3 %vm670_vm1, %v1903_v54 }
  0xb0   : > { %1834 = vmatmul.msk.bf16.gmra.mxu0 %vm670_vm1, %v1904_v56  ;;  %1838 = vmatmul.msk.bf16.gmra.mxu1 %vm670_vm1, %v1904_v56  ;;  %v2748_v52 = vpop.permute.xlu0 %417 }
  0xb1   : > { %1842 = vmatmul.msk.bf16.gmra.mxu2 %vm670_vm1, %v1904_v56  ;;  %v2750_v53 = vpop.permute.xlu1 %407 }
  0xb2   : > { %1846 = vmatmul.msk.bf16.gmra.mxu3 %vm670_vm1, %v1904_v56 }
  0xbd   : > { %v503_v58 = vpop.f32.mrf.mxu0  ;;  %v542_v59 = vpop.f32.mrf.mxu1 }
  0xbe   : > { %v504_v55 = vadd.f32 %v503_v58, %v388_v51 }
  0xc0   : > { %1835 = vmatmul.msk.bf16.gmra.mxu0 %vm670_vm1, %v1905_v57  ;;  %1839 = vmatmul.msk.bf16.gmra.mxu1 %vm670_vm1, %v1905_v57 }
  0xc1   : > { %1843 = vmatmul.msk.bf16.gmra.mxu2 %vm670_vm1, %v1905_v57 }
  0xc2   : > { %1847 = vmatmul.msk.bf16.gmra.mxu3 %vm670_vm1, %v1905_v57 }
  0xc4   : > { %v581_v60 = vpop.f32.mrf.mxu2 }
  0xc5   : > { %v620_v61 = vpop.f32.mrf.mxu3  ;;  %v2657_v62 = vpop.f32.mrf.mxu0 }
  0xc6   : > { %v2659_v63 = vpop.f32.mrf.mxu1 }
  0xcc   : > { %v2661_v0 = vpop.f32.mrf.mxu2 }
  0xcd   : > { %v2666_v2 = vpop.f32.mrf.mxu3  ;;  %v2668_v3 = vpop.f32.mrf.mxu0 }
  0xce   : > { %v2670_v4 = vpop.f32.mrf.mxu1 }
  0xd0   : > { %1836 = vmatmul.msk.bf16.gmra.mxu0 %vm670_vm1, %v1906_v1  ;;  %1840 = vmatmul.msk.bf16.gmra.mxu1 %vm670_vm1, %v1906_v1 }
  0xd1   : > { %1844 = vmatmul.msk.bf16.gmra.mxu2 %vm670_vm1, %v1906_v1 }
  0xd2   : > { %1848 = vmatmul.msk.bf16.gmra.mxu3 %vm670_vm1, %v1906_v1  ;;  %v543_v1 = vadd.f32 %v542_v59, %v388_v51 }
  0xd4   : > { %v2676_v5 = vpop.f32.mrf.mxu2 }
  0xd5   : > { %v2678_v6 = vpop.f32.mrf.mxu3  ;;  %v2680_v7 = vpop.f32.mrf.mxu0 }
  0xd6   : > { %v2682_v8 = vpop.f32.mrf.mxu1 }
  0xdc   : > { %v2684_v9 = vpop.f32.mrf.mxu2 }
  0xdd   : > { %v2686_v10 = vpop.f32.mrf.mxu3  ;;  %v2688_v11 = vpop.f32.mrf.mxu0 }
  0xde   : > { %v2690_v12 = vpop.f32.mrf.mxu1 }
  0xe4   : > { %v2692_v13 = vpop.f32.mrf.mxu2 }
  0xe5   : > { %v2694_v14 = vpop.f32.mrf.mxu3  ;;  %v2696_v15 = vpop.f32.mrf.mxu0 }
  0xe6   : > { %v2698_v16 = vpop.f32.mrf.mxu1 }
  0xec   : > { %v2700_v17 = vpop.f32.mrf.mxu2 }
  0xed   : > { %v2702_v18 = vpop.f32.mrf.mxu3  ;;  %v2704_v19 = vpop.f32.mrf.mxu0 }
  0xee   : > { %v2706_v20 = vpop.f32.mrf.mxu1 }
  0xf4   : > { %v2708_v21 = vpop.f32.mrf.mxu2 }
  0xf5   : > { %v2710_v22 = vpop.f32.mrf.mxu3  ;;  %v2712_v25 = vpop.f32.mrf.mxu0 }
  0xf6   : > { %v2714_v26 = vpop.f32.mrf.mxu1 }
  0xfc   : > { %v2716_v27 = vpop.f32.mrf.mxu2 }
  0xfd   : > { %v2718_v28 = vpop.f32.mrf.mxu3  ;;  %v2720_v29 = vpop.f32.mrf.mxu0 }
  0xfe   : > { %3940 = vst [vmem:[#allocation19_spill] sm:$0xff] %v2720_v29  ;;  %v2722_v33 = vpop.f32.mrf.mxu1 }
  0xff   : > { %3941 = vst [vmem:[#allocation20_spill] sm:$0xff] %v2722_v33 }
 0x104   : > { %v2724_v35 = vpop.f32.mrf.mxu2 }
 0x105   : > { %3942 = vst [vmem:[#allocation21_spill] sm:$0xff] %v2724_v35  ;;  %v2726_v36 = vpop.f32.mrf.mxu3  ;;  %v2728_v37 = vpop.f32.mrf.mxu0 }
 0x106   : > { %3943 = vst [vmem:[#allocation22_spill] sm:$0xff] %v2726_v36  ;;  %v2730_v40 = vpop.f32.mrf.mxu1 }
 0x107   : > { %3944 = vst [vmem:[#allocation23_spill] sm:$0xff] %v2728_v37 }
 0x108   : > { %3945 = vst [vmem:[#allocation24_spill] sm:$0xff] %v2730_v40 }
 0x10c   : > { %v2732_v43 = vpop.f32.mrf.mxu2 }
 0x10d   : > { %3946 = vst [vmem:[#allocation25_spill] sm:$0xff] %v2732_v43  ;;  %v2734_v44 = vpop.f32.mrf.mxu3  ;;  %v2736_v45 = vpop.f32.mrf.mxu0 }
 0x10e   : > { %3947 = vst [vmem:[#allocation26_spill] sm:$0xff] %v2734_v44  ;;  %v2738_v46 = vpop.f32.mrf.mxu1 }
 0x10f   : > { %3948 = vst [vmem:[#allocation27_spill] sm:$0xff] %v2736_v45  ;;  %v621_v45 = vadd.f32 %v620_v61, %v388_v51 }
 0x110   : > { %3949 = vst [vmem:[#allocation28_spill] sm:$0xff] %v2738_v46  ;;  %v2760_v46 = vpop.permute.xlu0 %422 }
 0x114   : > { %v2740_v47 = vpop.f32.mrf.mxu2 }
 0x115   : > { %3950 = vst [vmem:[#allocation29_spill] sm:$0xff] %v2740_v47  ;;  %v2742_v48 = vpop.f32.mrf.mxu3  ;;  %v2744_v49 = vpop.f32.mrf.mxu0 }
 0x116   : > { %3951 = vst [vmem:[#allocation30_spill] sm:$0xff] %v2742_v48  ;;  %v2746_v50 = vpop.f32.mrf.mxu1 }
 0x117   : > { %3952 = vst [vmem:[#allocation31_spill] sm:$0xff] %v2744_v49  ;;  %v393_v49 = vpop.permute.xlu2 %392 }
 0x118   : > { %3953 = vst [vmem:[#allocation32_spill] sm:$0xff] %v2746_v50  ;;  %v582_v50 = vadd.f32 %v581_v60, %v388_v51  ;;  %v506_v37 = vadd.f32 %v2657_v62, %v393_v49  ;;  %v584_v60 = vadd.f32 %v2661_v0, %v393_v49  ;;  %v398_v61 = vpop.permute.xlu0 %397  ;;  %v623_v62 = vadd.f32 %v2666_v2, %v393_v49 }
 0x119   : > { %v587_v29 = vadd.f32 %v2676_v5, %v398_v61  ;;  %v626_v2 = vadd.f32 %v2678_v6, %v398_v61 }
 0x11c   : > { %v2752_v54 = vpop.f32.mrf.mxu2 }
 0x11d   : > { %3954 = vst [vmem:[#allocation33_spill] sm:$0xff] %v2752_v54  ;;  %v2754_v56 = vpop.f32.mrf.mxu3  ;;  %v692_v57 = vpop.f32.mrf.mxu0 }
 0x11e   : > { %3955 = vst [vmem:[#allocation34_spill] sm:$0xff] %v2754_v56  ;;  %v2756_v44 = vadd.f32 %v692_v57, %v504_v55  ;;  %v721_v47 = vpop.f32.mrf.mxu1  ;;  %v545_v56 = vadd.f32 %v2659_v63, %v393_v49  ;;  %v2770_v57 = vpop.permute.xlu1 %412 }
 0x11f   : > { %v2758_v48 = vadd.f32 %v721_v47, %v543_v1 }
 0x120   : > { %3956 = vst [vmem:[#allocation35_spill] sm:$0xff] %v2756_v44 }
 0x121   : > { %3957 = vst [vmem:[#allocation36_spill] sm:$0xff] %v2758_v48 }
 0x124   : > { %v750_v40 = vpop.f32.mrf.mxu2 }
 0x125   : > { %v2763_v33 = vadd.f32 %v750_v40, %v582_v50  ;;  %v779_v58 = vpop.f32.mrf.mxu3  ;;  %v694_v54 = vpop.f32.mrf.mxu0  ;;  %v509_v50 = vadd.f32 %v2668_v3, %v398_v61 }
 0x126   : > { %v2766_v59 = vadd.f32 %v779_v58, %v621_v45  ;;  %v2768_v55 = vadd.f32 %v694_v54, %v506_v37  ;;  %v723_v47 = vpop.f32.mrf.mxu1  ;;  %v548_v37 = vadd.f32 %v2670_v4, %v398_v61  ;;  %v403_v0 = vpop.permute.xlu1 %402 }
 0x127   : > { %3958 = vst [vmem:[#allocation37_spill] sm:$0xff] %v2763_v33  ;;  %v2772_v1 = vadd.f32 %v723_v47, %v545_v56  ;;  %v511_v3 = vadd.f32 %v2680_v7, %v403_v0  ;;  %v550_v4 = vadd.f32 %v2682_v8, %v403_v0  ;;  %v589_v5 = vadd.f32 %v2684_v9, %v403_v0 }
 0x128   : > { %3959 = vst [vmem:[#allocation38_spill] sm:$0xff] %v2766_v59  ;;  %v628_v6 = vadd.f32 %v2686_v10, %v403_v0  ;;  %v514_v7 = vadd.f32 %v2688_v11, %v2750_v53  ;;  %v592_v9 = vadd.f32 %v2692_v13, %v2750_v53  ;;  %v631_v0 = vadd.f32 %v2694_v14, %v2750_v53 }
 0x129   : > { %3960 = vst [vmem:[#allocation39_spill] sm:$0xff] %v2768_v55 }
 0x12a   : > { %3961 = vst [vmem:[#allocation40_spill] sm:$0xff] %v2772_v1 }
 0x12c   : > { %v752_v40 = vpop.f32.mrf.mxu2 }
 0x12d   : > { %v2777_v51 = vadd.f32 %v752_v40, %v584_v60  ;;  %v781_v63 = vpop.f32.mrf.mxu3  ;;  %v697_v45 = vpop.f32.mrf.mxu0 }
 0x12e   : > { %v2780_v54 = vadd.f32 %v781_v63, %v623_v62  ;;  %v2782_v58 = vadd.f32 %v697_v45, %v509_v50  ;;  %v726_v56 = vpop.f32.mrf.mxu1 }
 0x12f   : > { %3962 = vst [vmem:[#allocation41_spill] sm:$0xff] %v2777_v51  ;;  %v2784_v47 = vadd.f32 %v726_v56, %v548_v37 }
 0x130   : > { %3963 = vst [vmem:[#allocation42_spill] sm:$0xff] %v2780_v54 }
 0x131   : > { %3964 = vst [vmem:[#allocation43_spill] sm:$0xff] %v2782_v58 }
 0x132   : > { %3965 = vst [vmem:[#allocation44_spill] sm:$0xff] %v2784_v47 }
 0x134   : > { %v755_v49 = vpop.f32.mrf.mxu2 }
 0x135   : > { %v2789_v60 = vadd.f32 %v755_v49, %v587_v29  ;;  %v784_v40 = vpop.f32.mrf.mxu3  ;;  %v699_v43 = vpop.f32.mrf.mxu0 }
 0x136   : > { %v2792_v62 = vadd.f32 %v784_v40, %v626_v2  ;;  %v2794_v50 = vadd.f32 %v699_v43, %v511_v3  ;;  %v728_v63 = vpop.f32.mrf.mxu1  ;;  %v553_v43 = vadd.f32 %v2690_v12, %v2750_v53  ;;  %v516_v40 = vadd.f32 %v2696_v15, %v2770_v57 }
 0x137   : > { %3966 = vst [vmem:[#allocation45_spill] sm:$0xff] %v2789_v60  ;;  %v2796_v45 = vadd.f32 %v728_v63, %v550_v4  ;;  %v555_v12 = vadd.f32 %v2698_v16, %v2770_v57  ;;  %v594_v15 = vadd.f32 %v2700_v17, %v2770_v57  ;;  %v558_v17 = vadd.f32 %v2706_v20, %v2748_v52 }
 0x138   : > { %3967 = vst [vmem:[#allocation46_spill] sm:$0xff] %v2792_v62  ;;  %v597_v20 = vadd.f32 %v2708_v21, %v2748_v52 }
 0x139   : > { %3968 = vst [vmem:[#allocation47_spill] sm:$0xff] %v2794_v50 }
 0x13a   : > { %3969 = vst [vmem:[#allocation48_spill] sm:$0xff] %v2796_v45 }
 0x13c   : > { %v757_v61 = vpop.f32.mrf.mxu2 }
 0x13d   : > { %v2802_v29 = vadd.f32 %v757_v61, %v589_v5  ;;  %v786_v37 = vpop.f32.mrf.mxu3  ;;  %v702_v56 = vpop.f32.mrf.mxu0 }
 0x13e   : > { %v2804_v8 = vadd.f32 %v786_v37, %v628_v6  ;;  %v731_v2 = vpop.f32.mrf.mxu1  ;;  %v703_v49 = vadd.f32 %v702_v56, %v514_v7 }
 0x13f   : > { %3970 = vst [vmem:[#allocation49_spill] sm:$0xff] %v2802_v29  ;;  %v732_v3 = vadd.f32 %v731_v2, %v553_v43  ;;  %v633_v43 = vadd.f32 %v2702_v18, %v2770_v57 }
 0x140   : > { %3971 = vst [vmem:[#allocation50_spill] sm:$0xff] %v2804_v8  ;;  %v1865_v10 = vmul.f32 -1.442695, %v703_v49 }
 0x141   : > { %v1866_v4 = vmul.f32 -1.442695, %v732_v3 }
 0x142   : > { %2008 = vpow2.f32 %v1865_v10 }
 0x143   : > { %2010 = vpow2.f32 %v1866_v4 }
 0x144   : > { %v760_v11 = vpop.f32.mrf.mxu2 }
 0x145   : > { %v761_v63 = vadd.f32 %v760_v11, %v592_v9  ;;  %v789_v5 = vpop.f32.mrf.mxu3  ;;  %v704_v6 = vpop.f32.mrf.mxu0 }
 0x146   : > { %v790_v61 = vadd.f32 %v789_v5, %v631_v0  ;;  %v733_v7 = vpop.f32.mrf.mxu1  ;;  %v705_v13 = vadd.f32 %v704_v6, %v516_v40  ;;  %v519_v0 = vadd.f32 %v2704_v19, %v2748_v52 }
 0x147   : > { %v1867_v37 = vmul.f32 -1.442695, %v761_v63  ;;  %v734_v2 = vadd.f32 %v733_v7, %v555_v12 }
 0x148   : > { %v1868_v56 = vmul.f32 -1.442695, %v790_v61  ;;  %v1869_v14 = vmul.f32 -1.442695, %v705_v13  ;;  %v2009_v16 = vpop.eup %2008 }
 0x149   : > { %2012 = vpow2.f32 %v1867_v37  ;;  %v1870_v53 = vmul.f32 -1.442695, %v734_v2  ;;  %v2822_v11 = vadd.f32 1.0, %v2009_v16  ;;  %v2011_v63 = vpop.eup %2010  ;;  %v521_v2 = vadd.f32 %v2712_v25, %v2760_v46 }
 0x14a   : > { %2014 = vpow2.f32 %v1868_v56  ;;  %v2827_v57 = vadd.f32 1.0, %v2011_v63  ;;  %v636_v56 = vadd.f32 %v2710_v22, %v2748_v52 }
 0x14b   : > { %2016 = vpow2.f32 %v1869_v14  ;;  %vm1172_vm2 = vweird.f32 %v2822_v11 }
 0x14c   : > { %v762_v49 = vpop.f32.mrf.mxu2  ;;  %2018 = vpow2.f32 %v1870_v53  ;;  %v560_v53 = vadd.f32 %v2714_v26, %v2760_v46 }
 0x14d   : > { %v763_v3 = vadd.f32 %v762_v49, %v594_v15  ;;  %v791_v9 = vpop.f32.mrf.mxu3  ;;  %v707_v10 = vpop.f32.mrf.mxu0  ;;  %2020 = vrcp.f32 %v2822_v11 }
 0x14e   : > { %v792_v40 = vadd.f32 %v791_v9, %v633_v43  ;;  %v736_v4 = vpop.f32.mrf.mxu1  ;;  %v708_v6 = vadd.f32 %v707_v10, %v519_v0 }
 0x14f   : > { %v1871_v5 = vmul.f32 -1.442695, %v763_v3  ;;  %v2013_v18 = vpop.eup %2012  ;;  %v737_v7 = vadd.f32 %v736_v4, %v558_v17 }
 0x150   : > { %v2015_v12 = vpop.eup %2014  ;;  %v2829_v61 = vadd.f32 1.0, %v2013_v18  ;;  %v1872_v19 = vmul.f32 -1.442695, %v792_v40  ;;  %v1873_v43 = vmul.f32 -1.442695, %v708_v6 }
 0x151   : > { %2022 = vpow2.f32 %v1871_v5  ;;  %v2832_v37 = vadd.f32 1.0, %v2015_v12  ;;  %v2017_v13 = vpop.eup %2016  ;;  %v1874_v21 = vmul.f32 -1.442695, %v737_v7 }
 0x152   : > { %2024 = vrcp.f32 %v2827_v57  ;;  %v2019_v14 = vpop.eup %2018  ;;  %v2844_v15 = vadd.f32 1.0, %v2017_v13 }
 0x153   : > { %3972 = vst [vmem:[#allocation51_spill] sm:$0xff] %v2832_v37  ;;  %2026 = vrcp.f32 %v2829_v61  ;;  %v2846_v16 = vadd.f32 1.0, %v2019_v14  ;;  %v2848_v25 = vpop.eup %2020 }
 0x154   : > { %2028 = vrcp.f32 %v2832_v37  ;;  %v765_v49 = vpop.f32.mrf.mxu2  ;;  %v1168_v40 = vmul.f32 %v2848_v25, %v2822_v11  ;;  %vm1173_vm3 = vweird.f32 %v2848_v25 }
 0x155   : > { %2030 = vpow2.f32 %v1872_v19  ;;  %v766_v22 = vadd.f32 %v765_v49, %v597_v20  ;;  %v794_v52 = vpop.f32.mrf.mxu3  ;;  %v709_v3 = vpop.f32.mrf.mxu0  ;;  %v599_v20 = vadd.f32 %v2716_v27, %v2760_v46  ;;  %vm2941_vm4 = vmor %vm1172_vm2, %vm1173_vm3 }
 0x156   : > { %2032 = vrcp.f32 %v2844_v15  ;;  %v795_v9 = vadd.f32 %v794_v52, %v636_v56  ;;  %v710_v10 = vadd.f32 %v709_v3, %v521_v2  ;;  %v738_v26 = vpop.f32.mrf.mxu1  ;;  %v1169_v7 = vsub.f32 1.0, %v1168_v40 }
 0x157   : > { %v2023_v0 = vpop.eup %2022  ;;  %2034 = vrcp.f32 %v2846_v16  ;;  %v1875_v4 = vmul.f32 -1.442695, %v766_v22  ;;  %v739_v63 = vadd.f32 %v738_v26, %v560_v53  ;;  %v638_v56 = vadd.f32 %v2718_v28, %v2760_v46 }
 0x158   : > { %v2854_v17 = vpop.eup %2024  ;;  %v2856_v5 = vadd.f32 1.0, %v2023_v0  ;;  %2036 = vpow2.f32 %v1873_v43  ;;  %v1876_v18 = vmul.f32 -1.442695, %v795_v9  ;;  %v1877_v12 = vmul.f32 -1.442695, %v710_v10 }
 0x159   : > { %v2858_v6 = vpop.eup %2026  ;;  %2038 = vpow2.f32 %v1874_v21  ;;  %v1878_v2 = vmul.f32 -1.442695, %v739_v63  ;;  %v2871_v53 = vmul.f32 %v2854_v17, %v2827_v57  ;;  %v1170_v10 = vmul.f32 %v2848_v25, %v1169_v7 }
 0x15a   : > { %3973 = vst [vmem:[#allocation52_spill] sm:$0xff] %v2856_v5  ;;  %v2860_v19 = vpop.eup %2028  ;;  %2040 = vrcp.f32 %v2856_v5  ;;  %v2881_v28 = vmul.f32 %v2858_v6, %v2829_v61 }
 0x15b   : > { %3974 = vst [vmem:[#allocation53_spill] sm:$0xff] %v2860_v19  ;;  %v2031_v13 = vpop.eup %2030  ;;  %2042 = vpow2.f32 %v1875_v4  ;;  %v2885_v46 = vmul.f32 %v2860_v19, %v2832_v37  ;;  %v3988_v19 = vand.u32 2147483647, %v2822_v11 }
 0x15c   : > { %v2867_v14 = vpop.eup %2032  ;;  %v2873_v43 = vadd.f32 1.0, %v2031_v13  ;;  %2044 = vpow2.f32 %v1876_v18  ;;  %v767_v49 = vpop.f32.mrf.mxu2 }
 0x15d   : > { %v2877_v27 = vpop.eup %2034  ;;  %3976 = vst [vmem:[#allocation55_spill] sm:$0xff] %v2885_v46  ;;  %2046 = vpow2.f32 %v1877_v12  ;;  %v768_v22 = vadd.f32 %v767_v49, %v599_v20  ;;  %v796_v52 = vpop.f32.mrf.mxu3  ;;  %v2889_v9 = vmul.f32 %v2867_v14, %v2844_v15  ;;  %vm2994_vm14 = vcmp.eq.f32.partialorder %v3988_v19, 8.507059e+37 }
 0x15e   : > { %3975 = vst [vmem:[#allocation54_spill] sm:$0xff] %v2873_v43  ;;  %v2037_v3 = vpop.eup %2036  ;;  %2048 = vrcp.f32 %v2873_v43  ;;  %v797_v63 = vadd.f32 %v796_v52, %v638_v56 }
 0x15f   : > { %v2039_v0 = vpop.eup %2038  ;;  %v2894_v40 = vadd.f32 1.0, %v2037_v3  ;;  %2050 = vpow2.f32 %v1878_v2  ;;  %v1879_v4 = vmul.f32 -1.442695, %v768_v22  ;;  %v2907_v2 = vmul.f32 %v2877_v27, %v2846_v16 }
 0x160   : > { %v2896_v18 = vpop.eup %2040  ;;  %v2899_v13 = vadd.f32 1.0, %v2039_v0  ;;  %v2915_v3 = vadd.f32 %v2848_v25, %v1170_v10  ;;  %v1880_v20 = vmul.f32 -1.442695, %v797_v63 }
 0x161   : > { %3977 = vst [vmem:[#allocation56_spill] sm:$0xff] %v2896_v18  ;;  %v2043_v49 = vpop.eup %2042  ;;  %2052 = vrcp.f32 %v2894_v40  ;;  %v2919_v26 = vmul.f32 %v2896_v18, %v2856_v5  ;;  %v1298_v10 = vand.u32 2147483648, %v2894_v40  ;;  %vm1292_vm5 = vweird.f32 %v2894_v40 }
 0x162   : > { %v2045_v56 = vpop.eup %2044  ;;  %2054 = vrcp.f32 %v2899_v13  ;;  %v2912_v52 = vadd.f32 1.0, %v2043_v49  ;;  %v1296_v49 = vand.u32 2147483647, %v2894_v40  ;;  %vm1307_vm6 = vweird.f32 %v2899_v13 }
 0x163   : > { %v2047_v0 = vpop.eup %2046  ;;  %v2921_v7 = vadd.f32 1.0, %v2045_v56  ;;  %2056 = vpow2.f32 %v1879_v4  ;;  %v1311_v4 = vand.u32 2147483647, %v2899_v13  ;;  %v1299_v62 = vor.u32 1.1754944e-38, %v1298_v10 }
 0x164   : > { %v2923_v12 = vpop.eup %2048  ;;  %2058 = vrcp.f32 %v2912_v52  ;;  %v2926_v22 = vadd.f32 1.0, %v2047_v0  ;;  %vm2958_vm7 = vcmp.eq.f32.partialorder %v1296_v49, 8.507059e+37  ;;  %v3995_v44 = vsel %vm2941_vm4, %v2848_v25, %v2915_v3 }
 0x165   : > { %3978 = vst [vmem:[#allocation57_spill] sm:$0xff] %v2923_v12  ;;  %v2051_v21 = vpop.eup %2050  ;;  %v2933_v35 = vmul.f32 %v2923_v12, %v2873_v43  ;;  %2060 = vrcp.f32 %v2921_v7  ;;  %vm2965_vm8 = vcmp.eq.f32.partialorder %v1311_v4, 8.507059e+37  ;;  %v1313_v4 = vand.u32 2147483648, %v2899_v13 }
 0x166   : > { %2062 = vrcp.f32 %v2926_v22  ;;  %v2947_v56 = vadd.f32 1.0, %v2051_v21  ;;  %v1358_v29 = vand.u32 2147483648, %v2926_v22  ;;  %v1356_v47 = vand.u32 2147483647, %v2926_v22 }
 0x167   : > { %3979 = vst [vmem:[#allocation58_spill] sm:$0xff] %v2933_v35  ;;  %v2053_v36 = vpop.eup %2052  ;;  %2064 = vpow2.f32 %v1880_v20  ;;  %vm1352_vm10 = vweird.f32 %v2926_v22 }
 0x168   : > { %v2055_v45 = vpop.eup %2054  ;;  %v1288_v50 = vmul.f32 %v2053_v36, %v2894_v40  ;;  %2066 = vrcp.f32 %v2947_v56  ;;  %vm1293_vm9 = vweird.f32 %v2053_v36  ;;  %v1359_v49 = vor.u32 1.1754944e-38, %v1358_v29 }
 0x169   : > { %v2057_v60 = vpop.eup %2056  ;;  %v1303_v8 = vmul.f32 %v2055_v45, %v2899_v13  ;;  %vm1308_vm11 = vweird.f32 %v2055_v45  ;;  %vm1367_vm12 = vweird.f32 %v2947_v56  ;;  %vm2985_vm13 = vcmp.eq.f32.partialorder %v1356_v47, 8.507059e+37  ;;  %vm1294_vm15 = vmor %vm1292_vm5, %vm1293_vm9 }
 0x16a   : > { %v2969_v58 = vpop.eup %2058  ;;  %v1289_v54 = vsub.f32 1.0, %v1288_v50  ;;  %v2971_v51 = vadd.f32 1.0, %v2057_v60  ;;  %v1371_v60 = vand.u32 2147483647, %v2947_v56  ;;  %vm1309_vm2 = vmor %vm1307_vm6, %vm1308_vm11  ;;  %vm1233_vm9 = vweird.f32 %v2867_v14 }
 0x16b   : > { %v2973_v1 = vpop.eup %2060  ;;  %v1304_v10 = vsub.f32 1.0, %v1303_v8  ;;  %v1318_v0 = vmul.f32 %v2969_v58, %v2912_v52  ;;  %vm1322_vm11 = vweird.f32 %v2912_v52 }
 0x16c   : > { %v2063_v55 = vpop.eup %2062  ;;  %v1290_v59 = vmul.f32 %v2053_v36, %v1289_v54  ;;  %v1333_v50 = vmul.f32 %v2973_v1, %v2921_v7  ;;  %2068 = vrcp.f32 %v2971_v51  ;;  %v1373_v54 = vand.u32 2147483648, %v2947_v56 }
 0x16d   : > { %v2065_v29 = vpop.eup %2064  ;;  %v1305_v33 = vmul.f32 %v2055_v45, %v1304_v10  ;;  %v1319_v8 = vsub.f32 1.0, %v1318_v0  ;;  %v1348_v48 = vmul.f32 %v2063_v55, %v2926_v22  ;;  %v3991_v0 = vand.u32 2147483648, %v2822_v11 }
 0x16e   : > { %v2067_v43 = vpop.eup %2066  ;;  %v1334_v12 = vsub.f32 1.0, %v1333_v50  ;;  %v2990_v35 = vadd.f32 1.0, %v2065_v29  ;;  %v1291_v37 = vadd.f32 %v2053_v36, %v1290_v59  ;;  %vm1353_vm0 = vweird.f32 %v2063_v55 }
 0x16f   : > { %v1179_v46 = vor.u32 1.1754944e-38, %v3991_v0  ;;  %v1349_v47 = vsub.f32 1.0, %v1348_v48  ;;  %v1363_v5 = vmul.f32 %v2067_v43, %v2947_v56  ;;  %v1306_v50 = vadd.f32 %v2055_v45, %v1305_v33  ;;  %vm1354_vm6 = vmor %vm1352_vm10, %vm1353_vm0 }
 0x170   : > { %v3005_v59 = vmul.f32 %v2969_v58, %v1319_v8  ;;  %2070 = vrcp.f32 %v2990_v35  ;;  %v1295_v19 = vsel %vm1294_vm15, %v2053_v36, %v1291_v37  ;;  %v1314_v11 = vor.u32 1.1754944e-38, %v1313_v4 }
 0x171   : > { %v1350_v48 = vmul.f32 %v2063_v55, %v1349_v47  ;;  %v1364_v29 = vsub.f32 1.0, %v1363_v5  ;;  %v1300_v0 = vsel %vm2958_vm7, %v1299_v62, %v1295_v19  ;;  %v1310_v40 = vsel %vm1309_vm2, %v2055_v45, %v1306_v50 }
 0x172   : > { %v3013_v18 = vpop.eup %2068  ;;  %v3016_v33 = vmul.f32 %v2973_v1, %v1334_v12  ;;  %v1415_v8 = vmul.f32 %v1300_v0, %v2568_v30  ;;  %v1315_v36 = vsel %vm2965_vm8, %v1314_v11, %v1310_v40  ;;  %vm1368_vm3 = vweird.f32 %v2067_v43 }
 0x173   : > { %v1365_v37 = vmul.f32 %v2067_v43, %v1364_v29  ;;  %v1378_v13 = vmul.f32 %v3013_v18, %v2971_v51  ;;  %v1351_v5 = vadd.f32 %v2063_v55, %v1350_v48  ;;  %vm3023_vm5 = vcmp.eq.f32.partialorder %v1371_v60, 8.507059e+37  ;;  %vm1369_vm10 = vmor %vm1367_vm12, %vm1368_vm3 }
 0x174   : > { %v1374_v62 = vor.u32 1.1754944e-38, %v1373_v54  ;;  %v1416_v30 = vmul.f32 %v1315_v36, %v2574_v32  ;;  %v3994_v45 = vsub.f32 1.0, %v2889_v9  ;;  %vm1232_vm7 = vweird.f32 %v2844_v15 }
 0x175   : > { %vm1187_vm8 = vweird.f32 %v2827_v57  ;;  %v1379_v20 = vsub.f32 1.0, %v1378_v13  ;;  %v1355_v4 = vsel %vm1354_vm6, %v2063_v55, %v1351_v5  ;;  %v1366_v60 = vadd.f32 %v2067_v43, %v1365_v37  ;;  %vm1234_vm12 = vmor %vm1232_vm7, %vm1233_vm9 }
 0x176   : > { %v1230_v12 = vmul.f32 %v2867_v14, %v3994_v45  ;;  %v3037_v47 = vpop.eup %2070  ;;  %v1360_v22 = vsel %vm2985_vm13, %v1359_v49, %v1355_v4  ;;  %v1236_v9 = vand.u32 2147483647, %v2844_v15  ;;  %v1238_v54 = vand.u32 2147483648, %v2844_v15 }
 0x177   : > { %v1393_v55 = vmul.f32 %v3037_v47, %v2990_v35  ;;  %v1419_v50 = vmul.f32 %v1360_v22, %v2571_v31  ;;  %v1370_v19 = vsel %vm1369_vm10, %v2067_v43, %v1366_v60  ;;  %v1180_v56 = vsel %vm2994_vm14, %v1179_v46, %v3995_v44 }
 0x178   : > { %v1231_v32 = vadd.f32 %v2867_v14, %v1230_v12  ;;  %v1380_v49 = vmul.f32 %v3013_v18, %v1379_v20  ;;  %v1375_v11 = vsel %vm3023_vm5, %v1374_v62, %v1370_v19  ;;  %v1239_v31 = vor.u32 1.1754944e-38, %v1238_v54 }
 0x179   : > { %vm1382_vm13 = vweird.f32 %v2971_v51  ;;  %v1394_v43 = vsub.f32 1.0, %v1393_v55  ;;  %v1427_v63 = vpack.c.bf16 %v1419_v50, %v1415_v8  ;;  %v1420_v25 = vmul.f32 %v1375_v11, %v2579_v34 }
 0x17a   : > { %v1235_v48 = vsel %vm1234_vm12, %v2867_v14, %v1231_v32  ;;  %vm1237_vm4 = vcmp.eq.f32.partialorder %v1236_v9, 8.507059e+37  ;;  %v1407_v46 = vmul.f32 %v1180_v56, %v2594_v38  ;;  %v3996_v15 = vsub.f32 1.0, %v2871_v53  ;;  %v3218_v32 = vld [vmem:[%s2500_s16 + $0x10] sm:$0xff] }
 0x17b   : > { %v1240_v3 = vsel %vm1237_vm4, %v1239_v31, %v1235_v48  ;;  %vm1188_vm14 = vweird.f32 %v2854_v17  ;;  %vm1337_vm15 = vweird.f32 %v2921_v7  ;;  %1453 = vmatpush.bf16.msra.mxu0 %v1427_v63  ;;  %v1428_v14 = vpack.c.bf16 %v1420_v25, %v1416_v30 }
 0x17c   : > { %v1185_v10 = vmul.f32 %v2854_v17, %v3996_v15  ;;  %v1411_v29 = vmul.f32 %v1240_v3, %v2597_v39  ;;  %v3997_v0 = vand.u32 2147483647, %v2827_v57  ;;  %v1193_v38 = vand.u32 2147483648, %v2827_v57  ;;  %vm1189_vm5 = vmor %vm1187_vm8, %vm1188_vm14  ;;  %v3099_v57 = vld [vmem:[%s3874_s2 + $0x20] sm:$0xff] }
 0x17d   : > { %v4000_v40 = vsub.f32 1.0, %v2907_v2  ;;  %vm1247_vm2 = vweird.f32 %v2846_v16  ;;  %vm1248_vm3 = vweird.f32 %v2877_v27  ;;  %1472 = vmatpush.bf16.msra.mxu1 %v1428_v14  ;;  %v1251_v37 = vand.u32 2147483647, %v2846_v16 }
 0x17e   : > { %vm3075_vm0 = vcmp.eq.f32.partialorder %v3997_v0, 8.507059e+37  ;;  %v1186_v53 = vadd.f32 %v2854_v17, %v1185_v10  ;;  %v1423_v39 = vpack.c.bf16 %v1411_v29, %v1407_v46  ;;  %v1194_v36 = vor.u32 1.1754944e-38, %v1193_v38  ;;  %vm1249_vm8 = vmor %vm1247_vm2, %vm1248_vm3  ;;  %v4013_v10 = vld [vmem:[#allocation56_spill] sm:$0xff]  ;;  %v3184_v0 = vld [vmem:[%s2500_s16 + $0x58] sm:$0xff] }
 0x17f   : > { %v1245_v8 = vmul.f32 %v2877_v27, %v4000_v40  ;;  %v1253_v13 = vand.u32 2147483648, %v2846_v16  ;;  %vm1397_vm6 = vweird.f32 %v2990_v35  ;;  %v1321_v21 = vadd.f32 %v2969_v58, %v3005_v59  ;;  %4014 = vst [vmem:[#allocation56_spill] sm:$0xff] %v3184_v0 }
 0x180   : > { %v1190_v2 = vsel %vm1189_vm5, %v2854_v17, %v1186_v53  ;;  %vm1323_vm7 = vweird.f32 %v2969_v58  ;;  %v1395_v62 = vmul.f32 %v3037_v47, %v1394_v43  ;;  %1454 = vmatpush.bf16.msra.mxu0 %v1423_v39  ;;  %v1326_v59 = vand.u32 2147483647, %v2912_v52  ;;  %v2169_v53 = vld [vmem:[%s2500_s16 + $0x78] sm:$0xff] }
 0x181   : > { %v1246_v5 = vadd.f32 %v2877_v27, %v1245_v8  ;;  %v1195_v30 = vsel %vm3075_vm0, %v1194_v36, %v1190_v2  ;;  %v1254_v17 = vor.u32 1.1754944e-38, %v1253_v13  ;;  %vm1252_vm9 = vcmp.eq.f32.partialorder %v1251_v37, 8.507059e+37  ;;  %vm3113_vm10 = vmor %vm1322_vm11, %vm1323_vm7  ;;  %v4018_v13 = vld [vmem:[#allocation55_spill] sm:$0xff]  ;;  %v4020_v2 = vld [vmem:[#allocation53_spill] sm:$0xff] }
 0x182   : > { %v1408_v12 = vmul.f32 %v1195_v30, %v2602_v41  ;;  %v1328_v4 = vand.u32 2147483648, %v2912_v52  ;;  %v1325_v16 = vsel %vm3113_vm10, %v2969_v58, %v1321_v21  ;;  %v1381_v22 = vadd.f32 %v3013_v18, %v1380_v49 }
 0x183   : > { %v1250_v45 = vsel %vm1249_vm8, %v2877_v27, %v1246_v5  ;;  %vm1383_vm12 = vweird.f32 %v3013_v18  ;;  %v1386_v52 = vand.u32 2147483647, %v2971_v51  ;;  %v1388_v9 = vand.u32 2147483648, %v2971_v51  ;;  %1889 = vmatmul.msk.bf16.vlgmr.msra.gmra.mxu0 %vm670_vm1, %v3099_v57 }
 0x184   : > { %v1255_v60 = vsel %vm1252_vm9, %v1254_v17, %v1250_v45  ;;  %v1329_v41 = vor.u32 1.1754944e-38, %v1328_v4  ;;  %vm3126_vm11 = vmor %vm1382_vm13, %vm1383_vm12  ;;  %vm1327_vm4 = vcmp.eq.f32.partialorder %v1326_v59, 8.507059e+37  ;;  %vm1338_vm13 = vweird.f32 %v2973_v1  ;;  %v1908_v17 = vld [vmem:[%s3874_s2 + $0x28] sm:$0xff] }
 0x185   : > { %v1412_v27 = vmul.f32 %v1255_v60, %v2605_v42  ;;  %v1385_v58 = vsel %vm3126_vm11, %v3013_v18, %v1381_v22  ;;  %v1336_v42 = vadd.f32 %v2973_v1, %v3016_v33  ;;  %v1389_v50 = vor.u32 1.1754944e-38, %v1388_v9  ;;  %vm3142_vm14 = vmor %vm1337_vm15, %vm1338_vm13  ;;  %v4022_v60 = vld [vmem:[#allocation58_spill] sm:$0xff]  ;;  %v4024_v22 = vld [vmem:[#allocation57_spill] sm:$0xff] }
 0x186   : > { %v1330_v55 = vsel %vm1327_vm4, %v1329_v41, %v1325_v16  ;;  %v1341_v19 = vand.u32 2147483647, %v2921_v7  ;;  %vm1387_vm0 = vcmp.eq.f32.partialorder %v1386_v52, 8.507059e+37  ;;  %v1343_v33 = vand.u32 2147483648, %v2921_v7 }
 0x187   : > { %v1424_v54 = vpack.c.bf16 %v1412_v27, %v1408_v12  ;;  %v1417_v44 = vmul.f32 %v1330_v55, %v2551_v23  ;;  %v1340_v18 = vsel %vm3142_vm14, %v2973_v1, %v1336_v42  ;;  %v1390_v56 = vsel %vm1387_vm0, %v1389_v50, %v1385_v58  ;;  %v4021_v12 = vld [vmem:[#allocation51_spill] sm:$0xff]  ;;  %v4027_v58 = vld [vmem:[#allocation54_spill] sm:$0xff]  ;;  %v3228_v42 = vld [vmem:[%s2500_s16 + $0x30] sm:$0xff] }
 0x188   : > { %v1396_v49 = vadd.f32 %v3037_v47, %v1395_v62  ;;  %vm1398_vm15 = vweird.f32 %v3037_v47  ;;  %v1401_v11 = vand.u32 2147483647, %v2990_v35  ;;  %v1421_v48 = vmul.f32 %v1390_v56, %v2554_v24  ;;  %v3244_v23 = vld [vmem:[%s2500_s16 + $0x38] sm:$0xff] }
 0x189   : > { %1473 = vmatpush.bf16.msra.mxu1 %v1424_v54  ;;  %v1344_v31 = vor.u32 1.1754944e-38, %v1343_v33  ;;  %vm3158_vm2 = vmor %vm1397_vm6, %vm1398_vm15  ;;  %v1403_v1 = vand.u32 2147483648, %v2990_v35  ;;  %v4009_v7 = vsub.f32 1.0, %v2881_v28  ;;  %vm1342_vm3 = vcmp.eq.f32.partialorder %v1341_v19, 8.507059e+37  ;;  %4030 = vst [vmem:[#allocation53_spill] sm:$0xff] %v3244_v23 }
 0x18a   : > { %v1400_v63 = vsel %vm3158_vm2, %v3037_v47, %v1396_v49  ;;  %vm1202_vm5 = vweird.f32 %v2829_v61  ;;  %vm1203_vm7 = vweird.f32 %v2858_v6  ;;  %v1429_v24 = vpack.c.bf16 %v1421_v48, %v1417_v44  ;;  %v3240_v48 = vld [vmem:[%s2500_s16 + $0x18] sm:$0xff] }
 0x18b   : > { %v1200_v43 = vmul.f32 %v2858_v6, %v4009_v7  ;;  %v1345_v25 = vsel %vm1342_vm3, %v1344_v31, %v1340_v18  ;;  %v1404_v3 = vor.u32 1.1754944e-38, %v1403_v1  ;;  %vm1402_vm6 = vcmp.eq.f32.partialorder %v1401_v11, 8.507059e+37  ;;  %vm3174_vm8 = vmor %vm1202_vm5, %vm1203_vm7  ;;  %4029 = vst [vmem:[#allocation55_spill] sm:$0xff] %v3240_v48 }
 0x18c   : > { %1891 = vmatmul.msk.bf16.vlgmr.msra.gmra.mxu1 %vm670_vm1, %v3099_v57  ;;  %v1206_v47 = vand.u32 2147483647, %v2829_v61  ;;  %v1208_v46 = vand.u32 2147483648, %v2829_v61  ;;  %v4012_v15 = vsub.f32 1.0, %v2919_v26  ;;  %1491 = vmatpush.bf16.msra.mxu2 %v1429_v24  ;;  %v1418_v34 = vmul.f32 %v3184_v0, %v1345_v25  ;;  %v4015_v26 = vld [vmem:[#allocation52_spill] sm:$0xff] }
 0x18d   : > { %v1201_v35 = vadd.f32 %v2858_v6, %v1200_v43  ;;  %v1405_v29 = vsel %vm1402_vm6, %v1404_v3, %v1400_v63  ;;  %vm1263_vm9 = vweird.f32 %v4013_v10  ;;  %vm1262_vm10 = vweird.f32 %v4015_v26  ;;  %4028 = vst [vmem:[#allocation52_spill] sm:$0xff] %v3228_v42  ;;  %v4031_v43 = vld [vmem:[#allocation35_spill] sm:$0xff]  ;;  %v4032_v24 = vld [vmem:[#allocation36_spill] sm:$0xff]  ;;  %v4033_v3 = vld [vmem:[#allocation37_spill] sm:$0xff] }
 0x18e   : > { %v1260_v14 = vmul.f32 %v4013_v10, %v4012_v15  ;;  %v1422_v40 = vmul.f32 %v2169_v53, %v1405_v29  ;;  %v1209_v8 = vor.u32 1.1754944e-38, %v1208_v46  ;;  %vm1207_vm12 = vcmp.eq.f32.partialorder %v1206_v47, 8.507059e+37  ;;  %vm3194_vm11 = vmor %vm1262_vm10, %vm1263_vm9  ;;  %v4034_v46 = vld [vmem:[#allocation38_spill] sm:$0xff]  ;;  %v4035_v29 = vld [vmem:[#allocation39_spill] sm:$0xff] }
 0x18f   : > { %v1205_v38 = vsel %vm3174_vm8, %v2858_v6, %v1201_v35  ;;  %v1266_v36 = vand.u32 2147483647, %v4015_v26  ;;  %v1268_v37 = vand.u32 2147483648, %v4015_v26  ;;  %v4019_v6 = vsub.f32 1.0, %v4018_v13  ;;  %v4038_v26 = vld [vmem:[#allocation42_spill] sm:$0xff]  ;;  %v4040_v13 = vld [vmem:[#allocation44_spill] sm:$0xff] }
 0x190   : > { %v1261_v61 = vadd.f32 %v4013_v10, %v1260_v14  ;;  %v1430_v21 = vpack.c.bf16 %v1422_v40, %v1418_v34  ;;  %v1210_v62 = vsel %vm1207_vm12, %v1209_v8, %v1205_v38  ;;  %vm1218_vm4 = vweird.f32 %v4020_v2  ;;  %v4036_v38 = vld [vmem:[#allocation40_spill] sm:$0xff]  ;;  %v4037_v40 = vld [vmem:[#allocation41_spill] sm:$0xff] }
 0x191   : > { %v1215_v5 = vmul.f32 %v4020_v2, %v4019_v6  ;;  %v1269_v59 = vor.u32 1.1754944e-38, %v1268_v37  ;;  %vm1217_vm13 = vweird.f32 %v4021_v12  ;;  %vm1267_vm14 = vcmp.eq.f32.partialorder %v1266_v36, 8.507059e+37  ;;  %v4039_v36 = vld [vmem:[#allocation43_spill] sm:$0xff]  ;;  %v4068_v0 = vld [vmem:[#allocation24_spill] sm:$0xff] }
 0x192   : > { %v1265_v30 = vsel %vm3194_vm11, %v4013_v10, %v1261_v61  ;;  %1510 = vmatpush.bf16.msra.mxu3 %v1430_v21  ;;  %v1221_v20 = vand.u32 2147483647, %v4021_v12  ;;  %v1223_v4 = vand.u32 2147483648, %v4021_v12  ;;  %v4023_v16 = vsub.f32 1.0, %v4022_v60  ;;  %vm3221_vm0 = vmor %vm1217_vm13, %vm1218_vm4 }
 0x193   : > { %v1216_v45 = vadd.f32 %v4020_v2, %v1215_v5  ;;  %v1270_v41 = vsel %vm1267_vm14, %v1269_v59, %v1265_v30  ;;  %v1409_v52 = vmul.f32 %v3218_v32, %v1210_v62  ;;  %vm1277_vm15 = vweird.f32 %v4027_v58  ;;  %1890 = vmatmul.msk.bf16.gmra.mxu0 %vm670_vm1, %v1908_v17  ;;  %v4041_v5 = vld [vmem:[#allocation45_spill] sm:$0xff]  ;;  %v4042_v30 = vld [vmem:[#allocation46_spill] sm:$0xff] }
 0x194   : > { %v1275_v27 = vmul.f32 %v4024_v22, %v4023_v16  ;;  %vm1278_vm2 = vweird.f32 %v4024_v22  ;;  %v1413_v54 = vmul.f32 %v3228_v42, %v1270_v41  ;;  %v1281_v51 = vand.u32 2147483647, %v4027_v58 }
 0x195   : > { %v1220_v55 = vsel %vm3221_vm0, %v4020_v2, %v1216_v45  ;;  %v1224_v19 = vor.u32 1.1754944e-38, %v1223_v4  ;;  %vm1279_vm3 = vmor %vm1277_vm15, %vm1278_vm2  ;;  %v1283_v44 = vand.u32 2147483648, %v4027_v58  ;;  %vm1222_vm5 = vcmp.eq.f32.partialorder %v1221_v20, 8.507059e+37  ;;  %v4043_v45 = vld [vmem:[#allocation47_spill] sm:$0xff]  ;;  %v4044_v4 = vld [vmem:[#allocation48_spill] sm:$0xff] }
 0x196   : > { %v1276_v50 = vadd.f32 %v4024_v22, %v1275_v27  ;;  %v1425_v18 = vpack.c.bf16 %v1413_v54, %v1409_v52  ;;  %vm1282_vm7 = vcmp.eq.f32.partialorder %v1281_v51, 8.507059e+37  ;;  %v1849_v63 = vmul.f32 -1.442695, %v4031_v43  ;;  %v4046_v51 = vld [vmem:[#allocation50_spill] sm:$0xff] }
 0x197   : > { %v1225_v56 = vsel %vm1222_vm5, %v1224_v19, %v1220_v55  ;;  %v1284_v49 = vor.u32 1.1754944e-38, %v1283_v44  ;;  %v1850_v25 = vmul.f32 -1.442695, %v4032_v24  ;;  %v1851_v35 = vmul.f32 -1.442695, %v4033_v3 }
 0x198   : > { %v1280_v33 = vsel %vm1279_vm3, %v4024_v22, %v1276_v50  ;;  %1492 = vmatpush.bf16.msra.mxu2 %v1425_v18  ;;  %v1410_v31 = vmul.f32 %v3240_v48, %v1225_v56  ;;  %2072 = vpow2.f32 %v1849_v63  ;;  %v1852_v15 = vmul.f32 -1.442695, %v4034_v46  ;;  %v4045_v22 = vld [vmem:[#allocation49_spill] sm:$0xff] }
 0x199   : > { %v1285_v11 = vsel %vm1282_vm7, %v1284_v49, %v1280_v33  ;;  %2074 = vpow2.f32 %v1850_v25  ;;  %v1853_v34 = vmul.f32 -1.442695, %v4035_v29  ;;  %v1854_v53 = vmul.f32 -1.442695, %v4036_v38 }
 0x19a   : > { %v1414_v1 = vmul.f32 %v3244_v23, %v1285_v11  ;;  %2076 = vpow2.f32 %v1851_v35  ;;  %v1855_v8 = vmul.f32 -1.442695, %v4037_v40  ;;  %v1856_v39 = vmul.f32 -1.442695, %v4038_v26 }
 0x19b   : > { %1893 = vmatmul.msk.bf16.vlgmr.msra.gmra.mxu2 %vm670_vm1, %v3099_v57  ;;  %2078 = vpow2.f32 %v1852_v15  ;;  %v1857_v37 = vmul.f32 -1.442695, %v4039_v36  ;;  %v1858_v6 = vmul.f32 -1.442695, %v4040_v13  ;;  %v1859_v21 = vmul.f32 -1.442695, %v4041_v5 }
 0x19c   : > { %1892 = vmatmul.msk.bf16.gmra.mxu1 %vm670_vm1, %v1908_v17  ;;  %v1426_v7 = vpack.c.bf16 %v1414_v1, %v1410_v31  ;;  %v1861_v12 = vmul.f32 -1.442695, %v4043_v45  ;;  %v1862_v60 = vmul.f32 -1.442695, %v4044_v4  ;;  %v1863_v27 = vmul.f32 -1.442695, %v4045_v22 }
 0x19d   : > { %v1864_v19 = vmul.f32 -1.442695, %v4046_v51  ;;  %v4051_v13 = vld [vmem:[#allocation21_spill] sm:$0xff]  ;;  %v4056_v4 = vld [vmem:[#allocation19_spill] sm:$0xff] }
 0x19e   : > { %1511 = vmatpush.bf16.msra.mxu3 %v1426_v7  ;;  %v2073_v28 = vpop.eup %2072 }
 0x19f   : > { %v2075_v47 = vpop.eup %2074  ;;  %v3258_v10 = vadd.f32 1.0, %v2073_v28 }
 0x1a0   : > { %v2077_v14 = vpop.eup %2076 }
 0x1a1   : > { %1895 = vmatmul.msk.bf16.vlgmr.msra.gmra.mxu3 %vm670_vm1, %v3099_v57  ;;  %v3260_v57 = vadd.f32 1.0, %v2075_v47  ;;  %2080 = vrcp.f32 %v3258_v10  ;;  %v3267_v61 = vadd.f32 1.0, %v2077_v14  ;;  %v2079_v2 = vpop.eup %2078  ;;  %vm868_vm6 = vweird.f32 %v3258_v10 }
 0x1a2   : > { %v3282_v52 = vadd.f32 1.0, %v2079_v2  ;;  %v4052_v2 = vld [vmem:[#allocation22_spill] sm:$0xff] }
 0x1a3   : > { %2082 = vrcp.f32 %v3260_v57  ;;  %vm883_vm10 = vweird.f32 %v3260_v57 }
 0x1a4   : > { %2084 = vpow2.f32 %v1853_v34 }
 0x1a5   : > { %2086 = vpow2.f32 %v1854_v53  ;;  %v428_v53 = vpop.permute.xlu2 %427 }
 0x1a6   : > { %2088 = vpow2.f32 %v1855_v8  ;;  %v3348_v5 = vadd.f32 %v4052_v2, %v428_v53 }
 0x1a7   : > { %2090 = vrcp.f32 %v3267_v61  ;;  %v3274_v62 = vpop.eup %2080 }
 0x1a8   : > { %2092 = vpow2.f32 %v1856_v39  ;;  %v864_v24 = vmul.f32 %v3274_v62, %v3258_v10 }
 0x1a9   : > { %v3277_v59 = vpop.eup %2082  ;;  %2094 = vpow2.f32 %v1857_v37 }
 0x1aa   : > { %v2085_v20 = vpop.eup %2084  ;;  %2096 = vpow2.f32 %v1858_v6  ;;  %v865_v29 = vsub.f32 1.0, %v864_v24  ;;  %v879_v40 = vmul.f32 %v3277_v59, %v3260_v57  ;;  %v3345_v6 = vadd.f32 %v4051_v13, %v428_v53 }
 0x1ab   : > { %1894 = vmatmul.msk.bf16.gmra.mxu2 %vm670_vm1, %v1908_v17  ;;  %v2087_v16 = vpop.eup %2086  ;;  %2098 = vpow2.f32 %v1859_v21  ;;  %v3286_v58 = vadd.f32 1.0, %v2085_v20  ;;  %v3350_v21 = vpop.permute.xlu0 %432  ;;  %vm884_vm12 = vweird.f32 %v3277_v59 }
 0x1ac   : > { %v2089_v41 = vpop.eup %2088  ;;  %v3288_v55 = vadd.f32 1.0, %v2087_v16  ;;  %v866_v36 = vmul.f32 %v3274_v62, %v865_v29  ;;  %4053 = vst [vmem:[#allocation35_spill] sm:$0xff] %v3350_v21  ;;  %v3460_v23 = vadd.f32 %v4068_v0, %v3350_v21  ;;  %v4073_v0 = vld [vmem:[#allocation31_spill] sm:$0xff]  ;;  %vm3492_vm13 = vmor %vm883_vm10, %vm884_vm12 }
 0x1ad   : > { %v3284_v9 = vpop.eup %2090  ;;  %v3292_v18 = vadd.f32 1.0, %v2089_v41  ;;  %v3443_v29 = vpop.permute.xlu2 %442  ;;  %v934_v48 = vand.u32 2147483648, %v3286_v58  ;;  %vm928_vm14 = vweird.f32 %v3286_v58 }
 0x1ae   : > { %v2093_v54 = vpop.eup %2092  ;;  %v3360_v20 = vmul.f32 %v3284_v9, %v3267_v61  ;;  %4063 = vst [vmem:[#allocation41_spill] sm:$0xff] %v3443_v29  ;;  %vm943_vm15 = vweird.f32 %v3288_v55 }
 0x1af   : > { %v2095_v50 = vpop.eup %2094  ;;  %v3295_v56 = vadd.f32 1.0, %v2093_v54 }
 0x1b0   : > { %v2097_v44 = vpop.eup %2096  ;;  %v3298_v11 = vadd.f32 1.0, %v2095_v50 }
 0x1b1   : > { %1896 = vmatmul.msk.bf16.gmra.mxu3 %vm670_vm1, %v1908_v17  ;;  %v1860_v17 = vmul.f32 -1.442695, %v4042_v30  ;;  %v2099_v33 = vpop.eup %2098  ;;  %v3300_v1 = vadd.f32 1.0, %v2097_v44  ;;  %vm869_vm1 = vweird.f32 %v3274_v62 }
 0x1b2   : > { %v3303_v43 = vadd.f32 1.0, %v2099_v33  ;;  %vm3419_vm8 = vmor %vm868_vm6, %vm869_vm1  ;;  %vm899_vm1 = vweird.f32 %v3284_v9 }
 0x1b3   : > { %2100 = vpow2.f32 %v1860_v17  ;;  %v4055_v17 = vld [vmem:[#allocation25_spill] sm:$0xff]  ;;  %vm1003_vm12 = vweird.f32 %v3300_v1 }
 0x1b4   : > { %2102 = vpow2.f32 %v1861_v12  ;;  %4047 = vst [vmem:[#allocation51_spill] sm:$0xff] %v3303_v43  ;;  %v3356_v45 = vadd.f32 %v4055_v17, %v3350_v21  ;;  %v880_v12 = vsub.f32 1.0, %v879_v40 }
 0x1b5   : > { %2104 = vpow2.f32 %v1862_v60  ;;  %v524_v60 = vadd.f32 %v4056_v4, %v428_v53 }
 0x1b6   : > { %2106 = vpow2.f32 %v1863_v27 }
 0x1b7   : > { %2108 = vrcp.f32 %v3282_v52 }
 0x1b8   : > { %2110 = vrcp.f32 %v3286_v58 }
 0x1b9   : > { %v2101_v49 = vpop.eup %2100  ;;  %2112 = vrcp.f32 %v3288_v55 }
 0x1ba   : > { %v2103_v31 = vpop.eup %2102  ;;  %2114 = vpow2.f32 %v1864_v19  ;;  %v3308_v25 = vadd.f32 1.0, %v2101_v49  ;;  %v867_v19 = vadd.f32 %v3274_v62, %v866_v36 }
 0x1bb   : > { %v2105_v7 = vpop.eup %2104  ;;  %2116 = vrcp.f32 %v3292_v18  ;;  %v3313_v35 = vadd.f32 1.0, %v2103_v31 }
 0x1bc   : > { %v2107_v63 = vpop.eup %2106  ;;  %2118 = vrcp.f32 %v3295_v56  ;;  %4048 = vst [vmem:[#allocation58_spill] sm:$0xff] %v3308_v25  ;;  %v3318_v47 = vadd.f32 1.0, %v2105_v7  ;;  %v874_v7 = vand.u32 2147483648, %v3258_v10 }
 0x1bd   : > { %v3310_v3 = vpop.eup %2108  ;;  %2120 = vrcp.f32 %v3298_v11  ;;  %v3323_v15 = vadd.f32 1.0, %v2107_v63 }
 0x1be   : > { %v3315_v28 = vpop.eup %2110  ;;  %2122 = vrcp.f32 %v3300_v1  ;;  %v3367_v22 = vmul.f32 %v3310_v3, %v3282_v52 }
 0x1bf   : > { %v3320_v46 = vpop.eup %2112  ;;  %2124 = vrcp.f32 %v3303_v43  ;;  %4049 = vst [vmem:[#allocation57_spill] sm:$0xff] %v3323_v15  ;;  %v924_v27 = vmul.f32 %v3315_v28, %v3286_v58  ;;  %vm929_vm4 = vweird.f32 %v3315_v28 }
 0x1c0   : > { %v2115_v14 = vpop.eup %2114  ;;  %2126 = vrcp.f32 %v3308_v25  ;;  %v3373_v41 = vmul.f32 %v3320_v46, %v3288_v55  ;;  %vm3502_vm0 = vmor %vm928_vm14, %vm929_vm4  ;;  %vm944_vm3 = vweird.f32 %v3320_v46  ;;  %vm913_vm14 = vweird.f32 %v3282_v52 }
 0x1c1   : > { %v3326_v34 = vpop.eup %2116  ;;  %2128 = vrcp.f32 %v3313_v35  ;;  %v3337_v26 = vadd.f32 1.0, %v2115_v14  ;;  %v872_v14 = vand.u32 2147483647, %v3258_v10  ;;  %v925_v36 = vsub.f32 1.0, %v924_v27  ;;  %vm3535_vm7 = vmor %vm943_vm15, %vm944_vm3 }
 0x1c2   : > { %v3329_v38 = vpop.eup %2118  ;;  %2130 = vrcp.f32 %v3318_v47  ;;  %v3380_v50 = vmul.f32 %v3326_v34, %v3292_v18  ;;  %v940_v17 = vsub.f32 1.0, %v3373_v41  ;;  %v871_v27 = vsel %vm3419_vm8, %v3274_v62, %v867_v19  ;;  %v4065_v41 = vld [vmem:[#allocation20_spill] sm:$0xff] }
 0x1c3   : > { %v3334_v8 = vpop.eup %2120  ;;  %2132 = vrcp.f32 %v3323_v15  ;;  %4050 = vst [vmem:[#allocation54_spill] sm:$0xff] %v3337_v26  ;;  %v3384_v51 = vmul.f32 %v3329_v38, %v3295_v56  ;;  %vm873_vm9 = vcmp.eq.f32.partialorder %v872_v14, 8.507059e+37  ;;  %v881_v62 = vmul.f32 %v3277_v59, %v880_v12  ;;  %v3452_v14 = vpop.permute.xlu1 %437  ;;  %v4067_v12 = vld [vmem:[#allocation23_spill] sm:$0xff] }
 0x1c4   : > { %v3339_v39 = vpop.eup %2122  ;;  %2134 = vrcp.f32 %v3337_v26  ;;  %v3392_v33 = vmul.f32 %v3334_v8, %v3298_v11  ;;  %v887_v19 = vand.u32 2147483647, %v3260_v57  ;;  %v563_v4 = vadd.f32 %v4065_v41, %v428_v53  ;;  %4066 = vst [vmem:[#allocation43_spill] sm:$0xff] %v3452_v14  ;;  %v4069_v53 = vld [vmem:[#allocation27_spill] sm:$0xff]  ;;  %v4070_v41 = vld [vmem:[#allocation28_spill] sm:$0xff] }
 0x1c5   : > { %v3342_v37 = vpop.eup %2124  ;;  %v3396_v49 = vmul.f32 %v3339_v39, %v3300_v1  ;;  %vm989_vm6 = vweird.f32 %v3334_v8  ;;  %vm898_vm8 = vweird.f32 %v3267_v61  ;;  %vm1004_vm4 = vweird.f32 %v3339_v39 }
 0x1c6   : > { %v3352_v30 = vpop.eup %2126  ;;  %v3400_v31 = vmul.f32 %v3342_v37, %v3303_v43  ;;  %vm3472_vm11 = vcmp.eq.f32.partialorder %v887_v19, 8.507059e+37  ;;  %v4074_v19 = vld [vmem:[#allocation32_spill] sm:$0xff]  ;;  %vm3607_vm15 = vmor %vm1003_vm12, %vm1004_vm4  ;;  %vm973_vm12 = vweird.f32 %v3295_v56  ;;  %vm1063_vm4 = vweird.f32 %v3318_v47 }
 0x1c7   : > { %4054 = vst [vmem:[#allocation36_spill] sm:$0xff] %v3352_v30  ;;  %v3363_v16 = vpop.eup %2128  ;;  %v3405_v63 = vmul.f32 %v3352_v30, %v3308_v25  ;;  %v875_v25 = vor.u32 1.1754944e-38, %v874_v7  ;;  %vm3628_vm3 = vmor %vm898_vm8, %vm899_vm1 }
 0x1c8   : > { %v3376_v54 = vpop.eup %2130  ;;  %v3409_v24 = vmul.f32 %v3363_v16, %v3313_v35 }
 0x1c9   : > { %v3388_v44 = vpop.eup %2132  ;;  %4058 = vst [vmem:[#allocation38_spill] sm:$0xff] %v3405_v63  ;;  %v3417_v13 = vmul.f32 %v3376_v54, %v3318_v47  ;;  %v876_v2 = vsel %vm873_vm9, %v875_v25, %v871_v27  ;;  %v889_v25 = vand.u32 2147483648, %v3260_v57  ;;  %v526_v27 = vadd.f32 %v4067_v12, %v3350_v21 }
 0x1ca   : > { %4057 = vst [vmem:[#allocation37_spill] sm:$0xff] %v3388_v44  ;;  %v3427_v10 = vmul.f32 %v3388_v44, %v3323_v15  ;;  %v3432_v40 = vpop.eup %2134  ;;  %v926_v15 = vmul.f32 %v3315_v28, %v925_v36  ;;  %v3464_v36 = vadd.f32 %v4069_v53, %v3452_v14  ;;  %v3468_v44 = vadd.f32 %v4070_v41, %v3452_v14  ;;  %v2174_v14 = vld [vmem:[%s2500_s16] sm:$0xff] }
 0x1cb   : > { %4062 = vst [vmem:[#allocation40_spill] sm:$0xff] %v3432_v40  ;;  %v3448_v7 = vmul.f32 %v3432_v40, %v3337_v26  ;;  %v1539_v40 = vsub.f32 1.0, %v876_v2  ;;  %v904_v53 = vand.u32 2147483648, %v3267_v61  ;;  %v890_v41 = vor.u32 1.1754944e-38, %v889_v25 }
 0x1cc   : > { %4061 = vst [vmem:[#allocation39_spill] sm:$0xff] %v3427_v10  ;;  %v882_v10 = vadd.f32 %v3277_v59, %v881_v62  ;;  %v932_v62 = vand.u32 2147483647, %v3286_v58  ;;  %v935_v25 = vor.u32 1.1754944e-38, %v934_v48  ;;  %v992_v12 = vand.u32 2147483647, %v3298_v11 }
 0x1cd   : > { %4064 = vst [vmem:[#allocation42_spill] sm:$0xff] %v3448_v7  ;;  %v3487_v7 = vadd.f32 %v4074_v19, %v3443_v29  ;;  %v1555_v21 = vmul.f32 %v2174_v14, %v1539_v40  ;;  %v919_v40 = vand.u32 2147483648, %v3282_v52  ;;  %vm988_vm9 = vweird.f32 %v3298_v11 }
 0x1ce   : > { %vm933_vm2 = vcmp.eq.f32.partialorder %v932_v62, 8.507059e+37  ;;  %vm3562_vm10 = vcmp.eq.f32.partialorder %v992_v12, 8.507059e+37 }
 0x200   : > { %v1456_v42 = vpop.f32.mrf.mxu0 }
 0x201   : > { %v1457_v26 = vadd.f32 %v1456_v42, %v524_v60  ;;  %v3478_v42 = vadd.f32 %v4073_v0, %v3443_v29  ;;  %v927_v60 = vadd.f32 %v3315_v28, %v926_v15  ;;  %v941_v15 = vmul.f32 %v3320_v46, %v940_v17 }
 0x202   : > { %v886_v0 = vsel %vm3492_vm13, %v3277_v59, %v882_v10  ;;  %v947_v17 = vand.u32 2147483647, %v3288_v55  ;;  %v3514_v59 = vor.u32 1.1754944e-38, %v904_v53  ;;  %v3523_v53 = vor.u32 1.1754944e-38, %v919_v40 }
 0x203   : > { %2136 = vtanh.f32 %v1457_v26  ;;  %v931_v58 = vsel %vm3502_vm0, %v3315_v28, %v927_v60  ;;  %v949_v26 = vand.u32 2147483648, %v3288_v55  ;;  %v891_v30 = vsel %vm3472_vm11, %v890_v41, %v886_v0  ;;  %vm3573_vm11 = vmor %vm988_vm9, %vm989_vm6 }
 0x204   : > { %v942_v19 = vadd.f32 %v3320_v46, %v941_v15  ;;  %v4079_v28 = vsub.f32 1.0, %v3392_v33  ;;  %vm3525_vm5 = vcmp.eq.f32.partialorder %v947_v17, 8.507059e+37  ;;  %v1540_v41 = vsub.f32 1.0, %v891_v30 }
 0x205   : > { %v4084_v55 = vsub.f32 1.0, %v3360_v20  ;;  %vm914_vm13 = vweird.f32 %v3310_v3  ;;  %v1054_v20 = vand.u32 2147483648, %v3313_v35  ;;  %vm958_vm9 = vweird.f32 %v3292_v18 }
 0x206   : > { %v986_v60 = vmul.f32 %v3334_v8, %v4079_v28  ;;  %v946_v62 = vsel %vm3535_vm7, %v3320_v46, %v942_v19  ;;  %v4085_v46 = vsub.f32 1.0, %v3396_v49  ;;  %v2176_v28 = vld [vmem:[%s2500_s16 + $0x20] sm:$0xff] }
 0x208   : > { %v1458_v29 = vpop.f32.mrf.mxu0  ;;  %v1001_v15 = vmul.f32 %v3339_v39, %v4085_v46 }
 0x209   : > { %v1475_v14 = vpop.f32.mrf.mxu1  ;;  %v2137_v57 = vpop.eup %2136  ;;  %v1459_v63 = vadd.f32 %v1458_v29, %v526_v27  ;;  %v994_v29 = vand.u32 2147483648, %v3298_v11 }
 0x20a   : > { %v1476_v10 = vadd.f32 %v1475_v14, %v563_v4  ;;  %v1571_v43 = vmul.f32 %v2137_v57, %v876_v2  ;;  %v936_v4 = vsel %vm933_vm2, %v935_v25, %v931_v58  ;;  %v950_v2 = vor.u32 1.1754944e-38, %v949_v26  ;;  %v2175_v58 = vld [vmem:[%s2500_s16 + $0x8] sm:$0xff] }
 0x20b   : > { %v962_v25 = vand.u32 2147483647, %v3292_v18  ;;  %v4086_v57 = vsub.f32 1.0, %v3367_v22  ;;  %v995_v14 = vor.u32 1.1754944e-38, %v994_v29  ;;  %v1556_v49 = vmul.f32 %v2175_v58, %v1540_v41  ;;  %v2177_v22 = vld [vmem:[%s2500_s16 + $0x28] sm:$0xff] }
 0x20c   : > { %2138 = vtanh.f32 %v1476_v10  ;;  %v1587_v27 = vadd.f32 %v1571_v43, %v1555_v21  ;;  %v987_v43 = vadd.f32 %v3334_v8, %v986_v60  ;;  %v896_v21 = vmul.f32 %v3284_v9, %v4084_v55 }
 0x20d   : > { %2140 = vtanh.f32 %v1459_v63  ;;  %v1543_v63 = vsub.f32 1.0, %v936_v4  ;;  %v911_v40 = vmul.f32 %v3310_v3, %v4086_v57  ;;  %v951_v17 = vsel %vm3525_vm5, %v950_v2, %v946_v62 }
 0x20e   : > { %1603 = vst [vmem:[%s3547_s10] sm:$0xff] %v1587_v27  ;;  %v991_v12 = vsel %vm3573_vm11, %v3334_v8, %v987_v43  ;;  %v4091_v29 = vsub.f32 1.0, %v3409_v24  ;;  %v3589_v2 = vadd.f32 %v3284_v9, %v896_v21  ;;  %v1007_v8 = vand.u32 2147483647, %v3300_v1  ;;  %vm3672_vm11 = vmor %vm913_vm14, %vm914_vm13 }
 0x20f   : > { %v1559_v60 = vmul.f32 %v2176_v28, %v1543_v63  ;;  %v1009_v24 = vand.u32 2147483648, %v3300_v1  ;;  %v1544_v62 = vsub.f32 1.0, %v951_v17  ;;  %v964_v21 = vand.u32 2147483648, %v3292_v18 }
 0x210   : > { %v1461_v48 = vpop.f32.mrf.mxu0  ;;  %vm1049_vm2 = vweird.f32 %v3363_v16  ;;  %v977_v57 = vand.u32 2147483647, %v3295_v56  ;;  %vm1048_vm5 = vweird.f32 %v3313_v35  ;;  %vm1008_vm7 = vcmp.eq.f32.partialorder %v1007_v8, 8.507059e+37 }
 0x211   : > { %v1477_v0 = vpop.f32.mrf.mxu1  ;;  %v1462_v41 = vadd.f32 %v1461_v48, %v3464_v36  ;;  %v4092_v36 = vand.u32 2147483647, %v3267_v61  ;;  %v1010_v58 = vor.u32 1.1754944e-38, %v1009_v24  ;;  %v901_v61 = vsel %vm3628_vm3, %v3284_v9, %v3589_v2  ;;  %vm3644_vm1 = vmor %vm1048_vm5, %vm1049_vm2 }
 0x212   : > { %v2139_v11 = vpop.eup %2138  ;;  %v1478_v26 = vadd.f32 %v1477_v0, %v3460_v23  ;;  %v1046_v23 = vmul.f32 %v3363_v16, %v4091_v29  ;;  %v3617_v0 = vadd.f32 %v3310_v3, %v911_v40  ;;  %v4102_v28 = vand.u32 2147483647, %v3282_v52 }
 0x213   : > { %v2141_v10 = vpop.eup %2140  ;;  %v1572_v19 = vmul.f32 %v2139_v11, %v891_v30  ;;  %v1002_v30 = vadd.f32 %v3339_v39, %v1001_v15  ;;  %vm3599_vm0 = vcmp.eq.f32.partialorder %v4092_v36, 8.507059e+37  ;;  %v1052_v15 = vand.u32 2147483647, %v3313_v35 }
 0x214   : > { %v1575_v27 = vmul.f32 %v2141_v10, %v936_v4  ;;  %2142 = vtanh.f32 %v1478_v26  ;;  %v996_v4 = vsel %vm3562_vm10, %v995_v14, %v991_v12  ;;  %v1047_v46 = vadd.f32 %v3363_v16, %v1046_v23 }
 0x215   : > { %v1588_v33 = vadd.f32 %v1572_v19, %v1556_v49  ;;  %2144 = vtanh.f32 %v1462_v41  ;;  %v1006_v1 = vsel %vm3607_vm15, %v3339_v39, %v1002_v30  ;;  %v1547_v11 = vsub.f32 1.0, %v996_v4 }
 0x216   : > { %v1591_v63 = vadd.f32 %v1575_v27, %v1559_v60  ;;  %v4099_v49 = vsub.f32 1.0, %v3417_v13  ;;  %v1560_v10 = vmul.f32 %v2177_v22, %v1544_v62  ;;  %vm3650_vm6 = vcmp.eq.f32.partialorder %v4102_v28, 8.507059e+37  ;;  %v2178_v27 = vld [vmem:[%s2500_s16 + $0x40] sm:$0xff] }
 0x217   : > { %1604 = vst [vmem:[%s3547_s10 + $0x8] sm:$0xff] %v1588_v33  ;;  %v1011_v12 = vsel %vm1008_vm7, %v1010_v58, %v1006_v1  ;;  %v1051_v9 = vsel %vm3644_vm1, %v3363_v16, %v1047_v46  ;;  %vm1053_vm8 = vcmp.eq.f32.partialorder %v1052_v15, 8.507059e+37  ;;  %v1055_v29 = vor.u32 1.1754944e-38, %v1054_v20  ;;  %v2179_v58 = vld [vmem:[%s2500_s16 + $0x48] sm:$0xff] }
 0x218   : > { %1607 = vst [vmem:[%s3547_s10 + $0x20] sm:$0xff] %v1591_v63  ;;  %v1061_v39 = vmul.f32 %v3376_v54, %v4099_v49  ;;  %vm1064_vm10 = vweird.f32 %v3376_v54  ;;  %v1563_v41 = vmul.f32 %v2178_v27, %v1547_v11  ;;  %v4105_v16 = vsub.f32 1.0, %v3380_v50  ;;  %v4116_v27 = vld [vmem:[#allocation51_spill] sm:$0xff] }
 0x219   : > { %v1480_v40 = vpop.f32.mrf.mxu1  ;;  %v1056_v8 = vsel %vm1053_vm8, %v1055_v29, %v1051_v9  ;;  %v1069_v24 = vand.u32 2147483648, %v3318_v47  ;;  %v1548_v62 = vsub.f32 1.0, %v1011_v12  ;;  %v906_v36 = vsel %vm3599_vm0, %v3514_v59, %v901_v61  ;;  %vm3688_vm13 = vmor %vm1063_vm4, %vm1064_vm10  ;;  %v4120_v63 = vld [vmem:[#allocation35_spill] sm:$0xff] }
 0x21a   : > { %v2143_v26 = vpop.eup %2142  ;;  %v1481_v19 = vadd.f32 %v1480_v40, %v3468_v44  ;;  %v1463_v44 = vpop.f32.mrf.mxu0  ;;  %v1062_v33 = vadd.f32 %v3376_v54, %v1061_v39  ;;  %v956_v2 = vmul.f32 %v3326_v34, %v4105_v16  ;;  %vm959_vm15 = vweird.f32 %v3326_v34 }
 0x21b   : > { %v1576_v13 = vmul.f32 %v2143_v26, %v951_v17  ;;  %v2145_v48 = vpop.eup %2144  ;;  %v1464_v17 = vadd.f32 %v1463_v44, %v3478_v42  ;;  %v4108_v52 = vsub.f32 1.0, %v3384_v51  ;;  %vm974_vm14 = vweird.f32 %v3329_v38  ;;  %vm3712_vm2 = vmor %vm958_vm9, %vm959_vm15 }
 0x21c   : > { %2146 = vtanh.f32 %v1481_v19  ;;  %v1579_v30 = vmul.f32 %v2145_v48, %v996_v4  ;;  %v1067_v4 = vand.u32 2147483647, %v3318_v47  ;;  %v916_v47 = vsel %vm3672_vm11, %v3310_v3, %v3617_v0  ;;  %vm3734_vm5 = vmor %vm973_vm12, %vm974_vm14 }
 0x21d   : > { %v1592_v23 = vadd.f32 %v1576_v13, %v1560_v10  ;;  %2148 = vtanh.f32 %v1464_v17  ;;  %v971_v46 = vmul.f32 %v3329_v38, %v4108_v52  ;;  %v1066_v51 = vsel %vm3688_vm13, %v3376_v54, %v1062_v33  ;;  %v2180_v10 = vld [vmem:[%s2500_s16 + $0x60] sm:$0xff]  ;;  %v4124_v52 = vld [vmem:[#allocation42_spill] sm:$0xff] }
 0x21e   : > { %v1494_v42 = vpop.f32.mrf.mxu2  ;;  %v1595_v50 = vadd.f32 %v1579_v30, %v1563_v41  ;;  %v957_v1 = vadd.f32 %v3326_v34, %v956_v2  ;;  %v1070_v20 = vor.u32 1.1754944e-38, %v1069_v24  ;;  %v1541_v11 = vsub.f32 1.0, %v906_v36  ;;  %v4117_v2 = vld [vmem:[#allocation38_spill] sm:$0xff]  ;;  %v4119_v24 = vld [vmem:[#allocation36_spill] sm:$0xff] }
 0x21f   : > { %1608 = vst [vmem:[%s3547_s10 + $0x28] sm:$0xff] %v1592_v23  ;;  %v1495_v55 = vadd.f32 %v1494_v42, %v3345_v6  ;;  %v1551_v6 = vsub.f32 1.0, %v1056_v8  ;;  %v1564_v3 = vmul.f32 %v2179_v58, %v1548_v62  ;;  %vm1068_vm0 = vcmp.eq.f32.partialorder %v1067_v4, 8.507059e+37  ;;  %v4122_v4 = vld [vmem:[#allocation43_spill] sm:$0xff] }
 0x220   : > { %1611 = vst [vmem:[%s3547_s10 + $0x40] sm:$0xff] %v1595_v50  ;;  %v921_v49 = vsel %vm3650_vm6, %v3523_v53, %v916_v47  ;;  %v972_v54 = vadd.f32 %v3329_v38, %v971_v46  ;;  %v1071_v39 = vsel %vm1068_vm0, %v1070_v20, %v1066_v51  ;;  %v4113_v53 = vsub.f32 1.0, %v3400_v31  ;;  %v4121_v50 = vld [vmem:[#allocation26_spill] sm:$0xff]  ;;  %v4127_v20 = vld [vmem:[#allocation55_spill] sm:$0xff] }
 0x221   : > { %v1482_v59 = vpop.f32.mrf.mxu1  ;;  %2150 = vtanh.f32 %v1495_v55  ;;  %v1567_v61 = vmul.f32 %v2180_v10, %v1551_v6  ;;  %v961_v28 = vsel %vm3712_vm2, %v3326_v34, %v957_v1  ;;  %vm963_vm3 = vcmp.eq.f32.partialorder %v962_v25, 8.507059e+37  ;;  %v4143_v47 = vld [vmem:[#allocation54_spill] sm:$0xff] }
 0x222   : > { %v2147_v43 = vpop.eup %2146  ;;  %v1483_v14 = vadd.f32 %v1482_v59, %v3487_v7  ;;  %v1016_v35 = vmul.f32 %v3342_v37, %v4113_v53  ;;  %v965_v60 = vor.u32 1.1754944e-38, %v964_v21  ;;  %v1542_v9 = vsub.f32 1.0, %v921_v49  ;;  %v4132_v53 = vld [vmem:[#allocation58_spill] sm:$0xff] }
 0x223   : > { %v1580_v0 = vmul.f32 %v2147_v43, %v1011_v12  ;;  %v2149_v40 = vpop.eup %2148  ;;  %v1557_v12 = vmul.f32 %v3218_v32, %v1541_v11  ;;  %v1552_v44 = vsub.f32 1.0, %v1071_v39  ;;  %v976_v32 = vsel %vm3734_vm5, %v3329_v38, %v972_v54  ;;  %v2181_v38 = vld [vmem:[%s2500_s16 + $0x68] sm:$0xff] }
 0x224   : > { %2152 = vtanh.f32 %v1483_v14  ;;  %v1513_v26 = vpop.f32.mrf.mxu3  ;;  %v1583_v19 = vmul.f32 %v2149_v40, %v1056_v8  ;;  %v979_v21 = vand.u32 2147483648, %v3295_v56  ;;  %v966_v29 = vsel %vm963_vm3, %v965_v60, %v961_v28 }
 0x225   : > { %v1596_v22 = vadd.f32 %v1580_v0, %v1564_v3  ;;  %v1514_v13 = vadd.f32 %v1513_v26, %v3348_v5  ;;  %v1017_v17 = vadd.f32 %v3342_v37, %v1016_v35  ;;  %vm1019_vm7 = vweird.f32 %v3342_v37  ;;  %v4135_v5 = vld [vmem:[#allocation30_spill] sm:$0xff] }
 0x226   : > { %v1496_v31 = vpop.f32.mrf.mxu2  ;;  %v1599_v34 = vadd.f32 %v1583_v19, %v1567_v61  ;;  %vm1018_vm1 = vweird.f32 %v4116_v27  ;;  %v1024_v41 = vand.u32 2147483648, %v4116_v27  ;;  %v1568_v33 = vmul.f32 %v2181_v38, %v1552_v44  ;;  %v4131_v61 = vld [vmem:[#allocation52_spill] sm:$0xff] }
 0x227   : > { %1612 = vst [vmem:[%s3547_s10 + $0x48] sm:$0xff] %v1596_v22  ;;  %v2151_v25 = vpop.eup %2150  ;;  %2154 = vtanh.f32 %v1514_v13  ;;  %v1497_v18 = vadd.f32 %v1496_v31, %v3356_v45  ;;  %v1022_v45 = vand.u32 2147483647, %v4116_v27  ;;  %v4118_v8 = vsub.f32 1.0, %v4117_v2  ;;  %vm3760_vm6 = vmor %vm1018_vm1, %vm1019_vm7  ;;  %v4138_v27 = vld [vmem:[#allocation41_spill] sm:$0xff] }
 0x228   : > { %v1573_v48 = vmul.f32 %v2151_v25, %v906_v36  ;;  %1615 = vst [vmem:[%s3547_s10 + $0x60] sm:$0xff] %v1599_v34  ;;  %v643_v62 = vadd.f32 %v4121_v50, %v4120_v63  ;;  %v4123_v36 = vld [vmem:[#allocation29_spill] sm:$0xff]  ;;  %v1090_v46 = vsub.f32 1.0, %v4124_v52  ;;  %v980_v15 = vor.u32 1.1754944e-38, %v979_v21 }
 0x229   : > { %2156 = vtanh.f32 %v1497_v18  ;;  %v1031_v42 = vmul.f32 %v4119_v24, %v4118_v8  ;;  %v607_v55 = vadd.f32 %v4123_v36, %v4122_v4  ;;  %v1545_v6 = vsub.f32 1.0, %v966_v29  ;;  %v4136_v25 = vld [vmem:[#allocation57_spill] sm:$0xff] }
 0x22a   : > { %v2153_v23 = vpop.eup %2152  ;;  %v1589_v30 = vadd.f32 %v1573_v48, %v1557_v12  ;;  %vm978_vm8 = vcmp.eq.f32.partialorder %v977_v57, 8.507059e+37  ;;  %v1021_v43 = vsel %vm3760_vm6, %v3342_v37, %v1017_v17  ;;  %v1558_v14 = vmul.f32 %v4127_v20, %v1542_v9  ;;  %v4128_v57 = vld [vmem:[#allocation39_spill] sm:$0xff]  ;;  %v2182_v8 = vld [vmem:[%s2500_s16 + $0x50] sm:$0xff] }
 0x22b   : > { %v1584_v16 = vmul.f32 %v2153_v23, %v1071_v39  ;;  %v981_v11 = vsel %vm978_vm8, %v980_v15, %v976_v32  ;;  %v1025_v3 = vor.u32 1.1754944e-38, %v1024_v41  ;;  %vm1023_vm9 = vcmp.eq.f32.partialorder %v1022_v45, 8.507059e+37  ;;  %v4130_v39 = vld [vmem:[#allocation37_spill] sm:$0xff] }
 0x22c   : > { %1605 = vst [vmem:[%s3547_s10 + $0x10] sm:$0xff] %v1589_v30  ;;  %v1515_v51 = vpop.f32.mrf.mxu3  ;;  %v1032_v56 = vadd.f32 %v4119_v24, %v1031_v42  ;;  %v4129_v54 = vsub.f32 1.0, %v4128_v57  ;;  %vm1034_vm10 = vweird.f32 %v4119_v24  ;;  %v1561_v19 = vmul.f32 %v4131_v61, %v1545_v6  ;;  %v4139_v45 = vld [vmem:[#allocation33_spill] sm:$0xff] }
 0x22d   : > { %v1600_v59 = vadd.f32 %v1584_v16, %v1568_v33  ;;  %v2155_v1 = vpop.eup %2154  ;;  %v1516_v58 = vadd.f32 %v1515_v51, %v643_v62  ;;  %v1026_v37 = vsel %vm1023_vm9, %v1025_v3, %v1021_v43  ;;  %v1039_v35 = vand.u32 2147483648, %v4132_v53  ;;  %v4140_v30 = vld [vmem:[#allocation53_spill] sm:$0xff] }
 0x22e   : > { %v1574_v0 = vmul.f32 %v2155_v1, %v921_v49  ;;  %v1499_v40 = vpop.f32.mrf.mxu2  ;;  %v1076_v26 = vmul.f32 %v4130_v39, %v4129_v54  ;;  %v1546_v13 = vsub.f32 1.0, %v981_v11  ;;  %vm1033_vm12 = vweird.f32 %v4132_v53  ;;  %v4144_v1 = vld [vmem:[#allocation34_spill] sm:$0xff] }
 0x22f   : > { %1616 = vst [vmem:[%s3547_s10 + $0x68] sm:$0xff] %v1600_v59  ;;  %v2157_v22 = vpop.eup %2156  ;;  %2158 = vtanh.f32 %v1516_v58  ;;  %v1500_v7 = vadd.f32 %v1499_v40, %v607_v55  ;;  %v1037_v28 = vand.u32 2147483647, %v4132_v53  ;;  %v1549_v12 = vsub.f32 1.0, %v1026_v37  ;;  %vm3782_vm11 = vmor %vm1033_vm12, %vm1034_vm10  ;;  %v2184_v53 = vld [vmem:[%s2500_s16 + $0x78] sm:$0xff] }
 0x230   : > { %v1590_v10 = vadd.f32 %v1574_v0, %v1558_v14  ;;  %v1577_v49 = vmul.f32 %v2157_v22, %v966_v29  ;;  %v1077_v31 = vadd.f32 %v4130_v39, %v1076_v26  ;;  %vm1079_vm4 = vweird.f32 %v4130_v39  ;;  %v4137_v29 = vld [vmem:[#allocation40_spill] sm:$0xff] }
 0x231   : > { %2160 = vtanh.f32 %v1500_v7  ;;  %v646_v34 = vadd.f32 %v4135_v5, %v4122_v4  ;;  %v1036_v44 = vsel %vm3782_vm11, %v4119_v24, %v1032_v56  ;;  %v1082_v18 = vand.u32 2147483647, %v4136_v25  ;;  %v4145_v56 = vld [vmem:[#allocation56_spill] sm:$0xff] }
 0x232   : > { %1606 = vst [vmem:[%s3547_s10 + $0x18] sm:$0xff] %v1590_v10  ;;  %v1593_v60 = vadd.f32 %v1577_v49, %v1561_v19  ;;  %v1084_v32 = vand.u32 2147483648, %v4136_v25  ;;  %v1040_v21 = vor.u32 1.1754944e-38, %v1039_v35  ;;  %vm1078_vm15 = vweird.f32 %v4136_v25 }
 0x233   : > { %v1091_v17 = vmul.f32 %v4137_v29, %v1090_v46  ;;  %v609_v41 = vadd.f32 %v4139_v45, %v4138_v27  ;;  %v1562_v38 = vmul.f32 %v4140_v30, %v1546_v13  ;;  %vm1038_vm13 = vcmp.eq.f32.partialorder %v1037_v28, 8.507059e+37  ;;  %vm3803_vm14 = vmor %vm1078_vm15, %vm1079_vm4 }
 0x234   : > { %1609 = vst [vmem:[%s3547_s10 + $0x30] sm:$0xff] %v1593_v60  ;;  %v1518_v48 = vpop.f32.mrf.mxu3  ;;  %v1565_v24 = vmul.f32 %v2182_v8, %v1549_v12  ;;  %v1041_v42 = vsel %vm1038_vm13, %v1040_v21, %v1036_v44  ;;  %v1081_v63 = vsel %vm3803_vm14, %v4130_v39, %v1077_v31  ;;  %vm1083_vm0 = vcmp.eq.f32.partialorder %v1082_v18, 8.507059e+37 }
 0x235   : > { %v2159_v23 = vpop.eup %2158  ;;  %v1519_v33 = vadd.f32 %v1518_v48, %v646_v34  ;;  %v1085_v4 = vor.u32 1.1754944e-38, %v1084_v32  ;;  %v1092_v46 = vadd.f32 %v4137_v29, %v1091_v17  ;;  %vm1094_vm2 = vweird.f32 %v4137_v29 }
 0x236   : > { %v1578_v2 = vmul.f32 %v2159_v23, %v981_v11  ;;  %v1501_v50 = vpop.f32.mrf.mxu2  ;;  %v1099_v6 = vand.u32 2147483648, %v4143_v47  ;;  %v1550_v59 = vsub.f32 1.0, %v1041_v42  ;;  %vm1093_vm3 = vweird.f32 %v4143_v47 }
 0x237   : > { %v2161_v62 = vpop.eup %2160  ;;  %2162 = vtanh.f32 %v1519_v33  ;;  %v1502_v36 = vadd.f32 %v1501_v50, %v609_v41  ;;  %v1086_v15 = vsel %vm1083_vm0, %v1085_v4, %v1081_v63  ;;  %v1097_v43 = vand.u32 2147483647, %v4143_v47  ;;  %vm1095_vm5 = vmor %vm1093_vm3, %vm1094_vm2 }
 0x238   : > { %v1594_v55 = vadd.f32 %v1578_v2, %v1562_v38  ;;  %v1581_v52 = vmul.f32 %v2161_v62, %v1026_v37  ;;  %v648_v20 = vadd.f32 %v4144_v1, %v4138_v27  ;;  %v1553_v14 = vsub.f32 1.0, %v1086_v15  ;;  %v2183_v37 = vld [vmem:[%s2500_s16 + $0x70] sm:$0xff] }
 0x239   : > { %2164 = vtanh.f32 %v1502_v36  ;;  %v1096_v11 = vsel %vm1095_vm5, %v4137_v29, %v1092_v46  ;;  %v1100_v0 = vor.u32 1.1754944e-38, %v1099_v6  ;;  %v1566_v57 = vmul.f32 %v4145_v56, %v1550_v59 }
 0x23a   : > { %1610 = vst [vmem:[%s3547_s10 + $0x38] sm:$0xff] %v1594_v55  ;;  %v1597_v51 = vadd.f32 %v1581_v52, %v1565_v24  ;;  %vm1098_vm7 = vcmp.eq.f32.partialorder %v1097_v43, 8.507059e+37  ;;  %v1569_v7 = vmul.f32 %v2183_v37, %v1553_v14 }
 0x23b   : > { %v1101_v26 = vsel %vm1098_vm7, %v1100_v0, %v1096_v11 }
 0x23c   : > { %1613 = vst [vmem:[%s3547_s10 + $0x50] sm:$0xff] %v1597_v51  ;;  %v1520_v58 = vpop.f32.mrf.mxu3  ;;  %v1554_v19 = vsub.f32 1.0, %v1101_v26 }
 0x23d   : > { %v2163_v3 = vpop.eup %2162  ;;  %v1521_v40 = vadd.f32 %v1520_v58, %v648_v20 }
 0x23e   : > { %v1582_v54 = vmul.f32 %v2163_v3, %v1041_v42  ;;  %v1570_v35 = vmul.f32 %v2184_v53, %v1554_v19 }
 0x23f   : > { %v2165_v39 = vpop.eup %2164  ;;  %2166 = vtanh.f32 %v1521_v40 }
 0x240   : > { %v1598_v22 = vadd.f32 %v1582_v54, %v1566_v57  ;;  %v1585_v10 = vmul.f32 %v2165_v39, %v1086_v15 }
 0x242   : > { %1614 = vst [vmem:[%s3547_s10 + $0x58] sm:$0xff] %v1598_v22  ;;  %v1601_v61 = vadd.f32 %v1585_v10, %v1569_v7 }
 0x244   : > { %1617 = vst [vmem:[%s3547_s10 + $0x70] sm:$0xff] %v1601_v61 }
 0x245   : > { %v2167_v49 = vpop.eup %2166 }
 0x246   : > { %v1586_v13 = vmul.f32 %v2167_v49, %v1101_v26 }
 0x248   : > { %v1602_v28 = vadd.f32 %v1586_v13, %v1570_v35 }
 0x24a   : > { %1618 = vst [vmem:[%s3547_s10 + $0x78] sm:$0xff] %v1602_v28 }
 0x24b   : > { %2272 = shalt.err (!%p2269_p11)
}
 0x24c   : > { %s2353_s23 = smov 512   ;;  %s2354_s6 = smov 1024  }
 0x24d   : > { %s2355_s28 = smov 32  }
 0x24e   : > { %1919 = dma.vmem_to_hbm [thread:$0]  (%p2451_p9), %s1635_s9, 2048, %s1637_s14, %s1620_s8, %s2353_s23, %s2354_s6, %s2355_s28  }
 0x24f PF: > { %s4147_s29 = sld [smem:[#allocation11_spill]]  ;;  %p1933_p13 = scmp.ge.s32.totalorder %s2347_s25, 2 }
 0x251   : > { %p1929_p0 = pnand %p1933_p13, %p2457_p12 }
 0x253   : > { %p1930_p1 = pneg %p1929_p0 }
 0x255   : > { %s1651_s12 = sand.u32 1, %s4147_s29  }
 0x256   : > { %s1652_s30 = scalar_lea.sflag [#allocation4], %s1651_s12 }
 0x257   : > { %2314 = dma.done.wait (%p1930_p1), %s1652_s30, 2048  }
 0x258   : > { %2316 = vsyncadd (%p1930_p1), %s1652_s30, 4294965248  ;;  %s24_s25 = sadd.s32 1, %s2347_s25   ;;  %s4149_s21 = sld [smem:[#allocation12_spill]] }
 0x259   : > { %p21_p2 = scmp.ge.s32.totalorder %s24_s25, 6   ;;  %s4150_s20 = sld [smem:[#allocation18_spill]] }
 0x25a   : > { %s4151_s22 = sld [smem:[#allocation13_spill]]  ;;  %s4154_s18 = smov %s2323_s19 }
 0x25b   : > { %s4152_s23 = sld [smem:[#allocation14_spill]] }
 0x25c   : > { %s4153_s0 = sld [smem:[#allocation15_spill]] }
 0x25e   : > { %s4155_s19 = smov %s4149_s21  ;;  %23 = sbr.rel (!%p21_p2) target bundleno = 11 (0xb), region = 98 }
 0x260   : > { %s4156_s21 = smov %s4151_s22  ;;  %s4157_s22 = smov %s2343_s24 }
 0x262   : > { %s4158_s24 = smov %s4153_s0 }
 0x263   :  { %1658 = vsyncpa [#allocation3], 1 }
 0x264   :  { %1660 = vsyncpa [#allocation3 + $0x1], 1 }
 0x265   :  { %1661 = vsyncpa [#allocation6], 1 }
 0x266   :  { %1663 = vsyncpa [#allocation6 + $0x1], 1 }
 0x267   :  { %1664 = vsyncpa [#allocation4], 1 }
 0x268   :  { %1666 = vsyncpa [#allocation4 + $0x1], 1 }

</bundles_post_ra>
